<compile_context>
chip_gen: v7x
topology: tpu7x:2x2x1
jax: 0.10.0
libtpu: 0.0.40
codegen_flags: <defaults>
</compile_context>

<pallas_src>
import functools
import numpy as np

import jax
import jax.numpy as jnp
from jax.experimental import pallas as pl
from jax.experimental.pallas import tpu as pltpu

# ----------------------------- config ---------------------------------------
EMBED_DIM = 128          # cfg.cross_attn_embed_dim == cfg.FEATURE_DIM
NUM_HEADS = 4            # cfg.cross_attn_num_heads
HEAD_DIM = EMBED_DIM // NUM_HEADS
MLP_RATIO = 2            # cfg.mlp_ratio
CROSS_ATTN_DEPTH = 1     # cfg.cross_attn_depth
DEN_FACTOR = 200.0       # cfg_data.DEN_FACTOR
LN_EPS = 1e-6
GAUSS_K = 5              # TODO(synk): real Gaussianlayer kernel size / sigma unknown
GAUSS_SIGMA = 1.0
PAD = GAUSS_K // 2

_g1d = np.arange(GAUSS_K, dtype=np.float64) - (GAUSS_K - 1) / 2.0
_g1d = np.exp(-_g1d ** 2 / (2.0 * GAUSS_SIGMA ** 2))
GAUSS_1D = (_g1d / _g1d.sum()).astype(np.float32)   # separable 1-D taps


# --------------------------- misc helpers ------------------------------------
_VMEM_LIMIT = None


def _vmem_limit_bytes():
    """Generation-aware scoped-VMEM limit (v5e/v6e: 96 MiB, v7x: ~48 MiB)."""
    global _VMEM_LIMIT
    if _VMEM_LIMIT is None:
        try:
            cap = int(pltpu.get_tpu_info().vmem_capacity_bytes)
        except Exception:                       # pragma: no cover - conservative
            cap = 64 * 1024 * 1024
        _VMEM_LIMIT = max(32 * 1024 * 1024,
                          min(cap - 16 * 1024 * 1024, 96 * 1024 * 1024))
    return _VMEM_LIMIT


def _cparams(*semantics):
    return pltpu.CompilerParams(dimension_semantics=semantics,
                                vmem_limit_bytes=_vmem_limit_bytes())


def _pick_tile(m, cap=1024):
    """Largest row-tile <= cap that divides m (keeps the (8,128) rule)."""
    for t in (1024, 512, 256, 128, 64, 32, 16, 8):
        if t <= cap and m % t == 0:
            return t
    return m


def _kv_chunk(n):
    """KV chunk for the in-kernel online softmax (statically unrolled)."""
    # TODO(synk): switch the chunk loop to lax.fori_loop + VMEM scratch when
    # n // chunk gets large (production N ~ 10k).
    for c in (512, 256, 128):
        if n > c and n % c == 0:
            return c
    return n


def _const2(pi, di):
    return (0, 0)


def _seq_map(pi, di):
    return (2 * pi + di, 0, 0)


def _partner_map(pi, di):
    return (2 * pi + 1 - di, 0, 0)


# --------------------------- fused encoder -----------------------------------
def _encoder_kernel(x_ref, w_ref, b_ref, o0_ref, o1_ref, o2_ref):
    """Synthetic 3-level encoder: one img read, three resident (3,C) weights."""
    x = x_ref[...].astype(jnp.bfloat16)                     # (tm, 3)
    outs = (o0_ref, o1_ref, o2_ref)
    for l in range(3):
        y = jnp.dot(x, w_ref[l], preferred_element_type=jnp.float32) + b_ref[l]
        outs[l][...] = jnp.maximum(y, 0.0).astype(jnp.bfloat16)


def encode(img_tok, enc_w, enc_b):
    """img_tok: (B*N, 3) f32 -> three (B*N, C) bf16 feature levels."""
    # TODO(synk): real VGG16_FPN / PCPVT / ResNet50_FPN encoder not provided.
    M, _ = img_tok.shape
    C = enc_w.shape[-1]
    tm = _pick_tile(M)
    out = jax.ShapeDtypeStruct((M, C), jnp.bfloat16)
    return pl.pallas_call(
        _encoder_kernel,
        out_shape=(out, out, out),
        grid=(M // tm,),
        in_specs=[pl.BlockSpec((tm, 3), lambda i: (i, 0)),
                  pl.BlockSpec(enc_w.shape, lambda i: (0, 0, 0)),   # resident
                  pl.BlockSpec(enc_b.shape, lambda i: (0, 0, 0))],
        out_specs=(pl.BlockSpec((tm, C), lambda i: (i, 0)),
                   pl.BlockSpec((tm, C), lambda i: (i, 0)),
                   pl.BlockSpec((tm, C), lambda i: (i, 0))),
        compiler_params=_cparams("parallel"),
    )(img_tok, enc_w, enc_b)


# --------------------------- fused cross-attention ----------------------------
def _cross_block_kernel(*refs, apply_fuse, apply_final_ln, kv_chunk):
    """One CrossAttentionBlock (+ optional fuse prologue / final LayerNorm)."""
    if apply_fuse:
        (q_ref, kv_ref, feat_ref, fwa_ref, fwb_ref, fb_ref,
         ln1g_ref, ln1b_ref, wq_ref, bq_ref, wk_ref, bk_ref, wv_ref, bv_ref,
         wo_ref, bo_ref, ln2g_ref, ln2b_ref, w1_ref, b1_ref, w2_ref, b2_ref,
         fng_ref, fnb_ref, o_ref) = refs
    else:
        (q_ref, kv_ref,
         ln1g_ref, ln1b_ref, wq_ref, bq_ref, wk_ref, bk_ref, wv_ref, bv_ref,
         wo_ref, bo_ref, ln2g_ref, ln2b_ref, w1_ref, b1_ref, w2_ref, b2_ref,
         fng_ref, fnb_ref, o_ref) = refs

    def ln(x, g, b):
        mu = jnp.mean(x, axis=-1, keepdims=True)
        var = jnp.mean(jnp.square(x - mu), axis=-1, keepdims=True)
        return (x - mu) * jax.lax.rsqrt(var + LN_EPS) * g + b

    if apply_fuse:
        # FeatureFusionModule surrogate fused into the block prologue:
        # q = relu(share @ Wa + feat @ Wb + b)   (no HBM round trip).
        q_in = jnp.dot(q_ref[0], fwa_ref[...], preferred_element_type=jnp.float32)
        q_in = q_in + jnp.dot(feat_ref[0], fwb_ref[...],
                              preferred_element_type=jnp.float32)
        q_in = jnp.maximum(q_in + fb_ref[...], 0.0)          # (N, C) f32
    else:
        q_in = q_ref[0].astype(jnp.float32)                  # (N, C) f32
    kv_in = kv_ref[0].astype(jnp.float32)

    # TODO(synk): exact CrossAttentionBlock norm placement on kv not given;
    # pre-norm with shared norm1 on q and kv is assumed.
    xq = ln(q_in, ln1g_ref[...], ln1b_ref[...]).astype(jnp.bfloat16)
    xkv = ln(kv_in, ln1g_ref[...], ln1b_ref[...]).astype(jnp.bfloat16)

    N, _ = q_in.shape
    # Full-width (C,C) projections; softmax scale is pre-folded into Wq.
    q = (jnp.dot(xq, wq_ref[...], preferred_element_type=jnp.float32)
         + bq_ref[...]).astype(jnp.bfloat16)
    k = (jnp.dot(xkv, wk_ref[...], preferred_element_type=jnp.float32)
         + bk_ref[...]).astype(jnp.bfloat16)
    v = (jnp.dot(xkv, wv_ref[...], preferred_element_type=jnp.float32)
         + bv_ref[...]).astype(jnp.bfloat16)

    nt_dims = (((1,), (1,)), ((), ()))        # A @ B.T without materializing B.T
    n_chunks = N // kv_chunk
    oh_list = []
    for h in range(NUM_HEADS):                # static unroll; heads = 4
        qh = q[:, h * HEAD_DIM:(h + 1) * HEAD_DIM]
        m_i = jnp.full((N, 1), -jnp.inf, jnp.float32)
        l_i = jnp.zeros((N, 1), jnp.float32)
        acc = jnp.zeros((N, HEAD_DIM), jnp.float32)
        for c in range(n_chunks):             # flash-style online softmax
            kh = k[c * kv_chunk:(c + 1) * kv_chunk, h * HEAD_DIM:(h + 1) * HEAD_DIM]
            vh = v[c * kv_chunk:(c + 1) * kv_chunk, h * HEAD_DIM:(h + 1) * HEAD_DIM]
            s = jax.lax.dot_general(qh, kh, nt_dims,
                                    preferred_element_type=jnp.float32)  # (N, ck)
            m_new = jnp.maximum(m_i, jnp.max(s, axis=-1, keepdims=True))
            alpha = jnp.exp(m_i - m_new)
            p = jnp.exp(s - m_new)
            l_i = alpha * l_i + jnp.sum(p, axis=-1, keepdims=True)
            acc = alpha * acc + jnp.dot(p.astype(jnp.bfloat16), vh,
                                        preferred_element_type=jnp.float32)
            m_i = m_new
        oh_list.append(acc * pl.reciprocal(l_i, approx=True))
    attn = jnp.concatenate(oh_list, axis=-1).astype(jnp.bfloat16)        # (N, C)

    x = q_in + jnp.dot(attn, wo_ref[...],
                       preferred_element_type=jnp.float32) + bo_ref[...]

    y = ln(x, ln2g_ref[...], ln2b_ref[...]).astype(jnp.bfloat16)
    h1 = jnp.dot(y, w1_ref[...], preferred_element_type=jnp.float32) + b1_ref[...]
    h1 = jax.nn.gelu(h1)          # TODO(synk): torch GELU default is erf, this is tanh
    out = x + jnp.dot(h1.astype(jnp.bfloat16), w2_ref[...],
                      preferred_element_type=jnp.float32) + b2_ref[...]
    if apply_final_ln:
        out = ln(out, fng_ref[...], fnb_ref[...])
    o_ref[0] = out.astype(jnp.bfloat16)


def cross_attn_level(q_src, kv_feat, self_feat, fuse_p, blocks, fn_g, fn_b):
    """Run all blocks of one level for every (pair, direction) in one grid."""
    B, N, C = q_src.shape
    P = B // 2
    kv_chunk = _kv_chunk(N)
    q = q_src
    for i, p in enumerate(blocks):
        apply_fuse = (self_feat is not None) and (i == 0)
        inputs = [q, kv_feat]
        in_specs = [pl.BlockSpec((1, N, C), _seq_map),
                    pl.BlockSpec((1, N, C), _partner_map)]
        if apply_fuse:
            inputs += [self_feat, fuse_p["wa"], fuse_p["wb"], fuse_p["b"]]
            in_specs += [pl.BlockSpec((1, N, C), _seq_map),
                         pl.BlockSpec((C, C), _const2),
                         pl.BlockSpec((C, C), _const2),
                         pl.BlockSpec((1, C), _const2)]
        block_w = (p["ln1_g"], p["ln1_b"], p["wq"], p["bq"], p["wk"], p["bk"],
                   p["wv"], p["bv"], p["wo"], p["bo"], p["ln2_g"], p["ln2_b"],
                   p["w1"], p["b1"], p["w2"], p["b2"], fn_g, fn_b)
        inputs += list(block_w)
        in_specs += [pl.BlockSpec(w.shape, _const2) for w in block_w]  # resident
        q = pl.pallas_call(
            functools.partial(_cross_block_kernel,
                              apply_fuse=apply_fuse,
                              apply_final_ln=(i == len(blocks) - 1),
                              kv_chunk=kv_chunk),
            out_shape=jax.ShapeDtypeStruct((B, N, C), jnp.bfloat16),
            grid=(P, 2),
            in_specs=in_specs,
            out_specs=pl.BlockSpec((1, N, C), _seq_map),
            compiler_params=_cparams("parallel", "parallel"),
        )(*inputs)
    return q


# --------------------------- fused decoders -----------------------------------
def _decoder_kernel(feat_ref, share_ref, wg_ref, ws_ref, scal_ref,
                    og_ref, os_ref, oio_ref):
    """global_dec / share_dec (1x1 conv C->1 + ReLU) + in_out_dec, lane-dense."""
    # TODO(synk): real GlobalDecoder / ShareDecoder / InOutDecoder nets unknown.
    feat = feat_ref[0].astype(jnp.float32)                  # (H, W, C)
    shf = share_ref[0].astype(jnp.float32)
    # VPU multiply + lane reduction -> (H, W) result is already lane-dense
    # (vs the old (M,1) matvec column stored at 1/128 lane density).
    g = jnp.sum(feat * wg_ref[...], axis=-1) + scal_ref[0]  # (H, W)
    s = jnp.sum(shf * ws_ref[...], axis=-1) + scal_ref[1]
    g = jnp.maximum(g, 0.0)
    s = jnp.maximum(s, 0.0)
    io = jnp.maximum((g - s) * scal_ref[2] + scal_ref[3], 0.0)
    og_ref[0] = g
    os_ref[0] = s
    oio_ref[0] = io


def fused_decoders(feat_nhwc, share_nhwc, params):
    B, H, W, C = feat_nhwc.shape
    scal = jnp.stack([params["global_dec"]["b"], params["share_dec"]["b"],
                      params["inout_dec"]["w"], params["inout_dec"]["b"]]
                     ).astype(jnp.float32)                   # (4,) in SMEM
    out = jax.ShapeDtypeStruct((B, H, W), jnp.float32)
    return pl.pallas_call(
        _decoder_kernel,
        out_shape=(out, out, out),
        grid=(B,),
        in_specs=[pl.BlockSpec((1, H, W, C), lambda b: (b, 0, 0, 0)),
                  pl.BlockSpec((1, H, W, C), lambda b: (b, 0, 0, 0)),
                  pl.BlockSpec((1, C), lambda b: (0, 0)),
                  pl.BlockSpec((1, C), lambda b: (0, 0)),
                  pl.BlockSpec(memory_space=pltpu.MemorySpace.SMEM)],
        out_specs=(pl.BlockSpec((1, H, W), lambda b: (b, 0, 0)),
                   pl.BlockSpec((1, H, W), lambda b: (b, 0, 0)),
                   pl.BlockSpec((1, H, W), lambda b: (b, 0, 0))),
        compiler_params=_cparams("parallel"),
    )(feat_nhwc, share_nhwc, params["global_dec"]["w"], params["share_dec"]["w"], scal)


# --------------------------- Gaussian blur + MSE -------------------------------
def _blur_mse_kernel(xpad_ref, pred_ref, den_ref, pdiv_ref, loss_ref):
    """Separable 5-tap Gaussian + MSE loss + /DEN_FACTOR, one map per grid step."""
    x = xpad_ref[0]                                 # (B, Hp, Wp)
    Bc, Hp, Wp = x.shape
    Hc, Wc = Hp - 2 * PAD, Wp - 2 * PAD
    tmp = jnp.zeros((Bc, Hc, Wp), jnp.float32)
    for di in range(GAUSS_K):                       # H pass (sublane slices)
        tmp = tmp + x[:, di:di + Hc, :] * float(GAUSS_1D[di])
    den = jnp.zeros((Bc, Hc, Wc), jnp.float32)
    for dj in range(GAUSS_K):                       # W pass
        # TODO(synk): replace lane-offset slices with masked pltpu.roll on a
        # 128-padded lane dim to avoid relayout copies at production W.
        den = den + tmp[:, :, dj:dj + Wc] * float(GAUSS_1D[dj])
    den_ref[0] = den
    pred = pred_ref[0]
    d = pred - den * DEN_FACTOR
    mse = jnp.sum(jnp.square(d)) * (1.0 / float(d.size))
    loss_ref[0] = jnp.zeros((8, 128), jnp.float32) + mse
    pdiv_ref[0] = pred * (1.0 / DEN_FACTOR)         # folded final scaling


def blur_and_mse_all(gt_stack, pred_stack):
    """gt_stack / pred_stack: (3, B, H, W).  One gridded call for all maps."""
    Mmaps, B, H, W = gt_stack.shape
    xpad = jnp.pad(gt_stack, ((0, 0), (0, 0), (PAD, PAD), (PAD, PAD)))
    den, pdiv, loss = pl.pallas_call(
        _blur_mse_kernel,
        out_shape=(jax.ShapeDtypeStruct((Mmaps, B, H, W), jnp.float32),
                   jax.ShapeDtypeStruct((Mmaps, B, H, W), jnp.float32),
                   jax.ShapeDtypeStruct((Mmaps, 8, 128), jnp.float32)),
        grid=(Mmaps,),
        in_specs=[pl.BlockSpec((1, B, H + 2 * PAD, W + 2 * PAD), lambda m: (m, 0, 0, 0)),
                  pl.BlockSpec((1, B, H, W), lambda m: (m, 0, 0, 0))],
        out_specs=(pl.BlockSpec((1, B, H, W), lambda m: (m, 0, 0, 0)),
                   pl.BlockSpec((1, B, H, W), lambda m: (m, 0, 0, 0)),
                   pl.BlockSpec((1, 8, 128), lambda m: (m, 0, 0))),
        compiler_params=_cparams("parallel"),
    )(xpad, pred_stack)
    return den, pdiv, loss[:, 0, 0]


# --------------------------- parameter init ----------------------------------
def init_params(key):
    C = EMBED_DIM
    hidden = C * MLP_RATIO
    keys = iter(jax.random.split(key, 256))

    def w(shape, scale=0.02):
        return jax.random.normal(next(keys), shape, jnp.float32) * scale

    def bf(x):
        return x.astype(jnp.bfloat16)

    qscale = HEAD_DIM ** -0.5

    def block_params():
        return {
            "ln1_g": jnp.ones((1, C), jnp.float32), "ln1_b": jnp.zeros((1, C), jnp.float32),
            # softmax scale folded into Wq (bq is zero so no bias scaling needed)
            "wq": bf(w((C, C)) * qscale), "bq": jnp.zeros((1, C), jnp.float32),
            "wk": bf(w((C, C))), "bk": jnp.zeros((1, C), jnp.float32),
            "wv": bf(w((C, C))), "bv": jnp.zeros((1, C), jnp.float32),
            "wo": bf(w((C, C))), "bo": jnp.zeros((1, C), jnp.float32),
            "ln2_g": jnp.ones((1, C), jnp.float32), "ln2_b": jnp.zeros((1, C), jnp.float32),
            "w1": bf(w((C, hidden))), "b1": jnp.zeros((1, hidden), jnp.float32),
            "w2": bf(w((hidden, C))), "b2": jnp.zeros((1, C), jnp.float32),
        }

    params = {
        "enc_w": bf(jnp.stack([w((3, C), 0.5) for _ in range(3)])),   # (3, 3, C)
        "enc_b": jnp.zeros((3, 1, C), jnp.float32),
        "cross": [[block_params() for _ in range(CROSS_ATTN_DEPTH)] for _ in range(3)],
        "final_norm_g": jnp.ones((1, C), jnp.float32),
        "final_norm_b": jnp.zeros((1, C), jnp.float32),
        "fuse": {"wa": bf(w((C, C))), "wb": bf(w((C, C))),
                 "b": jnp.zeros((1, C), jnp.float32)},
        "global_dec": {"w": w((1, C)), "b": jnp.zeros((), jnp.float32)},
        "share_dec": {"w": w((1, C)), "b": jnp.zeros((), jnp.float32)},
        "inout_dec": {"w": jnp.asarray(0.5, jnp.float32),
                      "b": jnp.zeros((), jnp.float32)},
    }
    return params


# ------------------------------ forward --------------------------------------
def video_counter_forward(params, img, targets):
    """img: (B, H, W, 3) NHWC float32; targets: list of dicts of numpy arrays."""
    B, H, W, _ = img.shape
    assert B % 2 == 0
    C = EMBED_DIM
    N = H * W
    img_pair_num = B // 2

    # ---- encoder: 3 feature levels (synthetic, feature_scale = 1), one kernel ----
    img_tok = img.reshape(B * N, 3)
    features = encode(img_tok, params["enc_w"], params["enc_b"])   # 3 x (B*N, C) bf16

    # ---- cross-attention levels (fuse folded into the first block of lv 1-2) ----
    share = None
    for l in range(3):
        feat_l = features[l].reshape(B, N, C)
        if share is None:
            q_src, self_feat = feat_l, None
        else:
            q_src, self_feat = share, feat_l
        share = cross_attn_level(q_src, feat_l, self_feat, params["fuse"],
                                 params["cross"][l],
                                 params["final_norm_g"], params["final_norm_b"])

    # ---- gt dot maps (glue: dynamic point counts -> numpy scatter) ----
    gt_share = np.zeros((B, H, W), np.float32)
    gt_in_out = np.zeros((B, H, W), np.float32)
    gt_global = np.zeros((B, H, W), np.float32)
    for pair_idx in range(img_pair_num):
        t0 = targets[pair_idx * 2]
        t1 = targets[pair_idx * 2 + 1]
        p0, p1 = t0["points"], t1["points"]
        sc0 = p0[t0["share_mask0"]].astype(np.int64)
        sc1 = p1[t1["share_mask1"]].astype(np.int64)
        gt_share[pair_idx * 2, sc0[:, 1], sc0[:, 0]] = 1.0
        gt_share[pair_idx * 2 + 1, sc1[:, 1], sc1[:, 0]] = 1.0
        oc = p0[t0["outflow_mask"]].astype(np.int64)
        ic = p1[t1["inflow_mask"]].astype(np.int64)
        gt_in_out[pair_idx * 2, oc[:, 1], oc[:, 0]] = 1.0
        gt_in_out[pair_idx * 2 + 1, ic[:, 1], ic[:, 0]] = 1.0
    for i, t in enumerate(targets):
        p = t["points"].astype(np.int64)
        gt_global[i, p[:, 1], p[:, 0]] = 1.0
    gt_stack = jnp.asarray(np.stack([gt_global, gt_share, gt_in_out], axis=0))

    # ---- fused global / share / in-out decoders (lane-dense outputs) ----
    feat_last = features[2].reshape(B, H, W, C)
    share_nhwc = share.reshape(B, H, W, C)
    pred_global, pred_share, pred_in_out = fused_decoders(feat_last, share_nhwc, params)
    pred_stack = jnp.stack([pred_global, pred_share, pred_in_out], axis=0)

    # ---- Gaussian targets + MSE losses + /DEN_FACTOR, one gridded kernel ----
    gt_den, pred_div, loss_vec = blur_and_mse_all(gt_stack, pred_stack)
    all_loss = {"global": loss_vec[0],
                "share": loss_vec[1] * 10.0,
                "in_out": loss_vec[2]}

    return (pred_div[0], gt_den[0],          # pre_global_den, gt_global_den
            pred_div[1], gt_den[1],          # pre_share_den,  gt_share_den
            pred_div[2], gt_den[2],          # pre_in_out_den, gt_in_out_den
            all_loss)


# -------------------------------- main ---------------------------------------
if __name__ == "__main__":
    key = jax.random.PRNGKey(0)
    k_img, k_params = jax.random.split(key)

    B, H, W = 2, 16, 16
    img = jax.random.normal(k_img, (B, H, W, 3), jnp.float32)
    params = init_params(k_params)

    # deterministic synthetic targets (points are (x, y) in [0, W) x [0, H))
    pts0 = np.array([[2, 3], [5, 7], [9, 1], [12, 12], [7, 14]], np.float32)
    pts1 = np.array([[3, 3], [6, 8], [10, 2], [13, 11], [8, 15], [1, 1]], np.float32)
    targets = [
        {"points": pts0,
         "share_mask0": np.array([True, True, False, True, False]),
         "outflow_mask": np.array([False, False, True, False, True])},
        {"points": pts1,
         "share_mask1": np.array([True, True, True, False, False, False]),
         "inflow_mask": np.array([False, False, False, True, True, True])},
    ]

    outs = video_counter_forward(params, img, targets)
    for x in jax.tree_util.tree_leaves(outs):
        jax.block_until_ready(x)

    (pre_g, gt_g, pre_s, gt_s, pre_io, gt_io, losses) = outs
    assert pre_g.shape == gt_g.shape == (B, H, W)
    assert pre_s.shape == gt_s.shape == (B, H, W)
    assert pre_io.shape == gt_io.shape == (B, H, W)
    assert all(np.isfinite(np.asarray(v)) for v in losses.values())
    print("KERNEL_OK")
</pallas_src>

<mosaic_0001>
module attributes {stable_mosaic.version = 11 : i64} {
  func.func @_encoder_kernel(%arg0: i32, %arg1: memref<512x3xf32, #tpu.memory_space<vmem>>, %arg2: memref<3x3x128xbf16, #tpu.memory_space<vmem>>, %arg3: memref<3x1x128xf32, #tpu.memory_space<vmem>>, %arg4: memref<512x128xbf16, #tpu.memory_space<vmem>>, %arg5: memref<512x128xbf16, #tpu.memory_space<vmem>>, %arg6: memref<512x128xbf16, #tpu.memory_space<vmem>>) attributes {dimension_semantics = [#tpu.dimension_semantics<parallel>], iteration_bounds = array<i64: 1>, scalar_prefetch = 0 : i64, scratch_operands = 0 : i64, tpu.core_type = #tpu.core_type<tc>, window_params = [{transform_indices = @transform_0, window_bounds = array<i64: 512, 3>}, {pipeline_mode = #tpu.pipeline_mode<synchronous>, transform_indices = @transform_1, window_bounds = array<i64: 3, 3, 128>}, {pipeline_mode = #tpu.pipeline_mode<synchronous>, transform_indices = @transform_2, window_bounds = array<i64: 3, 1, 128>}, {transform_indices = @transform_3, window_bounds = array<i64: 512, 128>}, {transform_indices = @transform_4, window_bounds = array<i64: 512, 128>}, {transform_indices = @transform_5, window_bounds = array<i64: 512, 128>}]} {
    %c0 = arith.constant 0 : index
    %c0_0 = arith.constant 0 : index
    %0 = vector.load %arg1[%c0, %c0_0] : memref<512x3xf32, #tpu.memory_space<vmem>>, vector<512x3xf32>
    %1 = arith.truncf %0 : vector<512x3xf32> to vector<512x3xbf16>
    %c0_1 = arith.constant 0 : index
    %c0_2 = arith.constant 0 : index
    %c0_3 = arith.constant 0 : index
    %2 = vector.load %arg2[%c0_1, %c0_2, %c0_3] : memref<3x3x128xbf16, #tpu.memory_space<vmem>>, vector<1x3x128xbf16>
    %3 = vector.shape_cast %2 : vector<1x3x128xbf16> to vector<3x128xbf16>
    %cst = arith.constant dense<0.000000e+00> : vector<512x128xf32>
    %4 = tpu.matmul %1, %3, %cst {dimension_numbers = #tpu.dot_dimension_numbers<[1], [0], [0], [1], [0, 0, 1, 1], [], []>} : vector<512x3xbf16>, vector<3x128xbf16>, vector<512x128xf32> -> vector<512x128xf32>
    %c0_4 = arith.constant 0 : index
    %c0_5 = arith.constant 0 : index
    %c0_6 = arith.constant 0 : index
    %5 = vector.load %arg3[%c0_4, %c0_5, %c0_6] : memref<3x1x128xf32, #tpu.memory_space<vmem>>, vector<1x1x128xf32>
    %6 = vector.shape_cast %5 : vector<1x1x128xf32> to vector<1x128xf32>
    %7 = vector.broadcast %6 : vector<1x128xf32> to vector<512x128xf32>
    %8 = arith.addf %4, %7 : vector<512x128xf32>
    %cst_7 = arith.constant 0.000000e+00 : f32
    %9 = vector.broadcast %cst_7 : f32 to vector<512x128xf32>
    %10 = arith.maximumf %8, %9 : vector<512x128xf32>
    %11 = arith.truncf %10 : vector<512x128xf32> to vector<512x128xbf16>
    %c0_8 = arith.constant 0 : index
    %c0_9 = arith.constant 0 : index
    %12 = vector.load %arg4[%c0_8, %c0_9] : memref<512x128xbf16, #tpu.memory_space<vmem>>, vector<512x128xbf16>
    tpu.vector_store %arg4[%c0_8, %c0_9], %11 {strides = array<i32>} : memref<512x128xbf16, #tpu.memory_space<vmem>>, vector<512x128xbf16>,
    %c1 = arith.constant 1 : index
    %c0_10 = arith.constant 0 : index
    %c0_11 = arith.constant 0 : index
    %13 = vector.load %arg2[%c1, %c0_10, %c0_11] : memref<3x3x128xbf16, #tpu.memory_space<vmem>>, vector<1x3x128xbf16>
    %14 = vector.shape_cast %13 : vector<1x3x128xbf16> to vector<3x128xbf16>
    %cst_12 = arith.constant dense<0.000000e+00> : vector<512x128xf32>
    %15 = tpu.matmul %1, %14, %cst_12 {dimension_numbers = #tpu.dot_dimension_numbers<[1], [0], [0], [1], [0, 0, 1, 1], [], []>} : vector<512x3xbf16>, vector<3x128xbf16>, vector<512x128xf32> -> vector<512x128xf32>
    %c1_13 = arith.constant 1 : index
    %c0_14 = arith.constant 0 : index
    %c0_15 = arith.constant 0 : index
    %16 = vector.load %arg3[%c1_13, %c0_14, %c0_15] : memref<3x1x128xf32, #tpu.memory_space<vmem>>, vector<1x1x128xf32>
    %17 = vector.shape_cast %16 : vector<1x1x128xf32> to vector<1x128xf32>
    %18 = vector.broadcast %17 : vector<1x128xf32> to vector<512x128xf32>
    %19 = arith.addf %15, %18 : vector<512x128xf32>
    %cst_16 = arith.constant 0.000000e+00 : f32
    %20 = vector.broadcast %cst_16 : f32 to vector<512x128xf32>
    %21 = arith.maximumf %19, %20 : vector<512x128xf32>
    %22 = arith.truncf %21 : vector<512x128xf32> to vector<512x128xbf16>
    %c0_17 = arith.constant 0 : index
    %c0_18 = arith.constant 0 : index
    %23 = vector.load %arg5[%c0_17, %c0_18] : memref<512x128xbf16, #tpu.memory_space<vmem>>, vector<512x128xbf16>
    tpu.vector_store %arg5[%c0_17, %c0_18], %22 {strides = array<i32>} : memref<512x128xbf16, #tpu.memory_space<vmem>>, vector<512x128xbf16>,
    %c2 = arith.constant 2 : index
    %c0_19 = arith.constant 0 : index
    %c0_20 = arith.constant 0 : index
    %24 = vector.load %arg2[%c2, %c0_19, %c0_20] : memref<3x3x128xbf16, #tpu.memory_space<vmem>>, vector<1x3x128xbf16>
    %25 = vector.shape_cast %24 : vector<1x3x128xbf16> to vector<3x128xbf16>
    %cst_21 = arith.constant dense<0.000000e+00> : vector<512x128xf32>
    %26 = tpu.matmul %1, %25, %cst_21 {dimension_numbers = #tpu.dot_dimension_numbers<[1], [0], [0], [1], [0, 0, 1, 1], [], []>} : vector<512x3xbf16>, vector<3x128xbf16>, vector<512x128xf32> -> vector<512x128xf32>
    %c2_22 = arith.constant 2 : index
    %c0_23 = arith.constant 0 : index
    %c0_24 = arith.constant 0 : index
    %27 = vector.load %arg3[%c2_22, %c0_23, %c0_24] : memref<3x1x128xf32, #tpu.memory_space<vmem>>, vector<1x1x128xf32>
    %28 = vector.shape_cast %27 : vector<1x1x128xf32> to vector<1x128xf32>
    %29 = vector.broadcast %28 : vector<1x128xf32> to vector<512x128xf32>
    %30 = arith.addf %26, %29 : vector<512x128xf32>
    %cst_25 = arith.constant 0.000000e+00 : f32
    %31 = vector.broadcast %cst_25 : f32 to vector<512x128xf32>
    %32 = arith.maximumf %30, %31 : vector<512x128xf32>
    %33 = arith.truncf %32 : vector<512x128xf32> to vector<512x128xbf16>
    %c0_26 = arith.constant 0 : index
    %c0_27 = arith.constant 0 : index
    %34 = vector.load %arg6[%c0_26, %c0_27] : memref<512x128xbf16, #tpu.memory_space<vmem>>, vector<512x128xbf16>
    tpu.vector_store %arg6[%c0_26, %c0_27], %33 {strides = array<i32>} : memref<512x128xbf16, #tpu.memory_space<vmem>>, vector<512x128xbf16>,
    return
  }
  func.func @transform_0(%arg0: i32) -> (i32, i32) {
    %c0_i32 = arith.constant 0 : i32
    %c0_i32_0 = arith.constant 0 : i32
    return %arg0, %c0_i32 : i32, i32
  }
  func.func @transform_1(%arg0: i32) -> (i32, i32, i32) {
    %c0_i32 = arith.constant 0 : i32
    %c0_i32_0 = arith.constant 0 : i32
    %c0_i32_1 = arith.constant 0 : i32
    %c0_i32_2 = arith.constant 0 : i32
    return %c0_i32, %c0_i32_0, %c0_i32_1 : i32, i32, i32
  }
  func.func @transform_2(%arg0: i32) -> (i32, i32, i32) {
    %c0_i32 = arith.constant 0 : i32
    %c0_i32_0 = arith.constant 0 : i32
    %c0_i32_1 = arith.constant 0 : i32
    %c0_i32_2 = arith.constant 0 : i32
    return %c0_i32, %c0_i32_0, %c0_i32_1 : i32, i32, i32
  }
  func.func @transform_3(%arg0: i32) -> (i32, i32) {
    %c0_i32 = arith.constant 0 : i32
    %c0_i32_0 = arith.constant 0 : i32
    return %arg0, %c0_i32 : i32, i32
  }
  func.func @transform_4(%arg0: i32) -> (i32, i32) {
    %c0_i32 = arith.constant 0 : i32
    %c0_i32_0 = arith.constant 0 : i32
    return %arg0, %c0_i32 : i32, i32
  }
  func.func @transform_5(%arg0: i32) -> (i32, i32) {
    %c0_i32 = arith.constant 0 : i32
    %c0_i32_0 = arith.constant 0 : i32
    return %arg0, %c0_i32 : i32, i32
  }
}

</mosaic_0001>

<bundles_post_ra>
// kernel: tpu_custom_call.1
= control target key start
LH: loop header
LB: loop body
LE: loop exit
PB: predicated region body
PF: predicated region fallthrough
CT: control target
= control target key end

     0   :  { %11 = vsyncpa [#allocation3], 0  ;;  %vm221_vm0 = vcmask 1040384   ;;  %vm222_vm1 = vcmask 1041408   ;;  %v3757_v2 = vmov 65535   ;;  %vm124_vm2 = vcmask 23552   ;;  %s4487_s0 = inlined_call_operand.vmem [shape: f32[512,3], index: 0, kind: input, shape index: {}]   ;;  %s4488_s1 = inlined_call_operand.vmem [shape: bf16[3,3,128], index: 1, kind: input, shape index: {}]   ;;  %s4489_s2 = inlined_call_operand.vmem [shape: f32[3,1,128], index: 2, kind: input, shape index: {}]   ;;  %s4490_s3 = inlined_call_operand.hbm [shape: bf16[512,128], index: 3, kind: output, shape index: {0}]   ;;  %s4491_s4 = inlined_call_operand.hbm [shape: bf16[512,128], index: 4, kind: output, shape index: {1}]   ;;  %s4492_s5 = inlined_call_operand.hbm [shape: bf16[512,128], index: 5, kind: output, shape index: {2}]  }
   0x1   :  { %v116_v0 = vld [vmem:[%s4488_s1] sm:$0x3]  ;;  %v223_v3 = vsel %vm221_vm0, 4294967295, %v3757_v2  ;;  %v21_v4 = vld [vmem:[%s4487_s0 + $0x8] sm:$0xff]  ;;  %v22_v10 = vld [vmem:[%s4487_s0 + $0x10] sm:$0xff] }
   0x2   :  { %v20_v1 = vld [vmem:[%s4487_s0] sm:$0xff]  ;;  %v53_v6 = vld [vmem:[%s4487_s0 + $0x108] sm:$0xff]  ;;  %v224_v7 = vsel %vm222_vm1, %v223_v3, 0  ;;  %v23_v11 = vld [vmem:[%s4487_s0 + $0x18] sm:$0xff] }
   0x3   :  { %v52_v5 = vld [vmem:[%s4487_s0 + $0x100] sm:$0xff]  ;;  %v3808_v8 = vpack.c.bf16 %v21_v4, %v20_v1  ;;  %v54_v12 = vld [vmem:[%s4487_s0 + $0x110] sm:$0xff]  ;;  %v226_v13 = vand.u32 %v224_v7, %v116_v0  ;;  %v55_v14 = vld [vmem:[%s4487_s0 + $0x118] sm:$0xff]  ;;  %v3843_v22 = vpack.c.bf16 %v23_v11, %v22_v10 }
   0x4   :  { %v3810_v9 = vpack.c.bf16 %v53_v6, %v52_v5  ;;  %v2417_v15 = vld [vmem:[%s4488_s1 + $0x2] sm:$0x3]  ;;  %v2516_v16 = vld [vmem:[%s4488_s1 + $0x4] sm:$0x3]  ;;  %v25_v20 = vld [vmem:[%s4487_s0 + $0x28] sm:$0xff]  ;;  %v3845_v23 = vpack.c.bf16 %v55_v14, %v54_v12 }
   0x5   :  { %3481 = vmatprep.mubr.msk.bf16.mxu0 %vm124_vm2, %v3808_v8  ;;  %v912_v17 = vand.u32 %v2417_v15, %v224_v7  ;;  %v1598_v18 = vand.u32 %v2516_v16, %v224_v7  ;;  %v24_v19 = vld [vmem:[%s4487_s0 + $0x20] sm:$0xff]  ;;  %3479 = vmatprep.subr.bf16.mxu0 %v226_v13  ;;  %v57_v24 = vld [vmem:[%s4487_s0 + $0x128] sm:$0xff]  ;;  %v26_v27 = vld [vmem:[%s4487_s0 + $0x30] sm:$0xff] }
   0x6   :  { %3513 = vmatprep.mubr.msk.bf16.mxu1 %vm124_vm2, %v3810_v9  ;;  %v56_v21 = vld [vmem:[%s4487_s0 + $0x120] sm:$0xff]  ;;  %3677 = vmatprep.subr.bf16.mxu1 %v226_v13  ;;  %v3850_v25 = vpack.c.bf16 %v25_v20, %v24_v19  ;;  %v27_v28 = vld [vmem:[%s4487_s0 + $0x38] sm:$0xff]  ;;  %v58_v29 = vld [vmem:[%s4487_s0 + $0x130] sm:$0xff] }
   0x7   :  { %3480 = vmatpush3.bf16.msra.mxu0 %v226_v13  ;;  %3678 = vmatpush3.bf16.msra.mxu1 %v226_v13  ;;  %v3852_v26 = vpack.c.bf16 %v57_v24, %v56_v21  ;;  %v59_v30 = vld [vmem:[%s4487_s0 + $0x138] sm:$0xff]  ;;  %v28_v31 = vld [vmem:[%s4487_s0 + $0x40] sm:$0xff]  ;;  %v29_v32 = vld [vmem:[%s4487_s0 + $0x48] sm:$0xff]  ;;  %v3886_v35 = vpack.c.bf16 %v27_v28, %v26_v27 }
   0x8   :  { %3545 = vmatprep.subr.bf16.mxu1 %v912_v17  ;;  %3611 = vmatprep.subr.bf16.mxu0 %v1598_v18  ;;  %v60_v33 = vld [vmem:[%s4487_s0 + $0x140] sm:$0xff]  ;;  %v61_v34 = vld [vmem:[%s4487_s0 + $0x148] sm:$0xff]  ;;  %v3888_v36 = vpack.c.bf16 %v59_v30, %v58_v29  ;;  %v3890_v37 = vpack.c.bf16 %v29_v32, %v28_v31  ;;  %v30_v39 = vld [vmem:[%s4487_s0 + $0x50] sm:$0xff] }
   0x9   :  { %v3892_v38 = vpack.c.bf16 %v61_v34, %v60_v33  ;;  %v31_v40 = vld [vmem:[%s4487_s0 + $0x58] sm:$0xff]  ;;  %v62_v41 = vld [vmem:[%s4487_s0 + $0x150] sm:$0xff]  ;;  %v32_v43 = vld [vmem:[%s4487_s0 + $0x60] sm:$0xff] }
   0xa   :  { %3482 = vmatmul.mubr.msk.bf16.vlgmr.msra.gmra.mrb[0].mxu0 %vm124_vm2, %v3843_v22  ;;  %3514 = vmatmul.mubr.msk.bf16.vlgmr.msra.gmra.mrb[0].mxu1 %vm124_vm2, %v3845_v23  ;;  %v63_v42 = vld [vmem:[%s4487_s0 + $0x158] sm:$0xff]  ;;  %v33_v44 = vld [vmem:[%s4487_s0 + $0x68] sm:$0xff]  ;;  %v64_v45 = vld [vmem:[%s4487_s0 + $0x160] sm:$0xff]  ;;  %v3926_v47 = vpack.c.bf16 %v31_v40, %v30_v39 }
   0xb   :  { %3546 = vmatpush3.bf16.msra.mxu1 %v912_v17  ;;  %3612 = vmatpush3.bf16.msra.mxu0 %v1598_v18  ;;  %v65_v46 = vld [vmem:[%s4487_s0 + $0x168] sm:$0xff]  ;;  %v3928_v48 = vpack.c.bf16 %v63_v42, %v62_v41  ;;  %v3930_v49 = vpack.c.bf16 %v33_v44, %v32_v43 }
   0xc   :  { %3485 = vmatprep.mubr.msk.bf16.mxu0 %vm124_vm2, %v3850_v25  ;;  %3517 = vmatprep.mubr.msk.bf16.mxu1 %vm124_vm2, %v3852_v26  ;;  %v3932_v50 = vpack.c.bf16 %v65_v46, %v64_v45 }
  0x12   :  { %3486 = vmatmul.mubr.msk.bf16.gmra.mrb[4].mxu0 %vm124_vm2, %v3886_v35  ;;  %3518 = vmatmul.mubr.msk.bf16.gmra.mrb[4].mxu1 %vm124_vm2, %v3888_v36 }
  0x13   :  { %3489 = vmatprep.mubr.msk.bf16.mxu0 %vm124_vm2, %v3890_v37  ;;  %3521 = vmatprep.mubr.msk.bf16.mxu1 %vm124_vm2, %v3892_v38 }
  0x14   :  { %12 = vsyncpa [#allocation5], 0  ;;  %v34_v51 = vld [vmem:[%s4487_s0 + $0x70] sm:$0xff]  ;;  %v35_v52 = vld [vmem:[%s4487_s0 + $0x78] sm:$0xff]  ;;  %s3758_s27 = smov [#allocation2]  }
  0x15   :  { %v66_v53 = vld [vmem:[%s4487_s0 + $0x170] sm:$0xff]  ;;  %v67_v54 = vld [vmem:[%s4487_s0 + $0x178] sm:$0xff]  ;;  %v36_v55 = vld [vmem:[%s4487_s0 + $0x80] sm:$0xff]  ;;  %v3966_v59 = vpack.c.bf16 %v35_v52, %v34_v51  ;;  %s2278_s28 = sshll.u32 %s3758_s27, 4  ;;  %s2279_s28 = int_to_ptr.vmem [resolvable:$true] %s2278_s28 }
  0x16   :  { %v37_v56 = vld [vmem:[%s4487_s0 + $0x88] sm:$0xff]  ;;  %v68_v57 = vld [vmem:[%s4487_s0 + $0x180] sm:$0xff]  ;;  %v3968_v60 = vpack.c.bf16 %v67_v54, %v66_v53  ;;  %v38_v63 = vld [vmem:[%s4487_s0 + $0x90] sm:$0xff]  ;;  %s3687_s29 = scalar_lea.vmem %s2279_s28, 4096  ;;  %p3692_p1 = scmp.lt.s32.totalorder %s2279_s28, %s2279_s28 }
  0x17   :  { %v69_v58 = vld [vmem:[%s4487_s0 + $0x188] sm:$0xff]  ;;  %v3970_v61 = vpack.c.bf16 %v37_v56, %v36_v55  ;;  %v39_v0 = vld [vmem:[%s4487_s0 + $0x98] sm:$0xff]  ;;  %v70_v1 = vld [vmem:[%s4487_s0 + $0x190] sm:$0xff]  ;;  %p3688_p0 = scmp.ne.s32.totalorder %s2279_s28, %s3687_s29  ;;  %p3693_p2 = scmp.lt.s32.totalorder %s3687_s29, %s3687_s29 }
  0x18   :  { %v3972_v62 = vpack.c.bf16 %v69_v58, %v68_v57  ;;  %v71_v2 = vld [vmem:[%s4487_s0 + $0x198] sm:$0xff]  ;;  %v40_v3 = vld [vmem:[%s4487_s0 + $0xa0] sm:$0xff]  ;;  %v41_v4 = vld [vmem:[%s4487_s0 + $0xa8] sm:$0xff]  ;;  %v4006_v7 = vpack.c.bf16 %v39_v0, %v38_v63 }
  0x19   :  { %v72_v5 = vld [vmem:[%s4487_s0 + $0x1a0] sm:$0xff]  ;;  %v73_v6 = vld [vmem:[%s4487_s0 + $0x1a8] sm:$0xff]  ;;  %v4008_v10 = vpack.c.bf16 %v71_v2, %v70_v1  ;;  %v4010_v11 = vpack.c.bf16 %v41_v4, %v40_v3  ;;  %v42_v13 = vld [vmem:[%s4487_s0 + $0xb0] sm:$0xff]  ;;  %p3694_p3 = por %p3693_p2, %p3692_p1 }
  0x1a   :  { %3490 = vmatmul.mubr.msk.bf16.gmra.mrb[8].mxu0 %vm124_vm2, %v3926_v47  ;;  %3522 = vmatmul.mubr.msk.bf16.gmra.mrb[8].mxu1 %vm124_vm2, %v3928_v48  ;;  %v4012_v12 = vpack.c.bf16 %v73_v6, %v72_v5  ;;  %v43_v14 = vld [vmem:[%s4487_s0 + $0xb8] sm:$0xff]  ;;  %v74_v15 = vld [vmem:[%s4487_s0 + $0x1b0] sm:$0xff]  ;;  %v44_v17 = vld [vmem:[%s4487_s0 + $0xc0] sm:$0xff] }
  0x1b   :  { %3493 = vmatprep.mubr.msk.bf16.mxu0 %vm124_vm2, %v3930_v49  ;;  %3525 = vmatprep.mubr.msk.bf16.mxu1 %vm124_vm2, %v3932_v50  ;;  %v75_v16 = vld [vmem:[%s4487_s0 + $0x1b8] sm:$0xff]  ;;  %v45_v18 = vld [vmem:[%s4487_s0 + $0xc8] sm:$0xff]  ;;  %v76_v19 = vld [vmem:[%s4487_s0 + $0x1c0] sm:$0xff]  ;;  %v95_v21 = vpack.c.bf16 %v43_v14, %v42_v13  ;;  %p3695_p4 = pnand %p3694_p3, %p3688_p0 }
  0x1c   :  { %v77_v20 = vld [vmem:[%s4487_s0 + $0x1c8] sm:$0xff]  ;;  %v4046_v24 = vpack.c.bf16 %v75_v16, %v74_v15  ;;  %v96_v27 = vpack.c.bf16 %v45_v18, %v44_v17  ;;  %v46_v29 = vld [vmem:[%s4487_s0 + $0xd0] sm:$0xff]  ;;  %v47_v30 = vld [vmem:[%s4487_s0 + $0xd8] sm:$0xff] }
  0x1d   :  { %v4048_v28 = vpack.c.bf16 %v77_v20, %v76_v19  ;;  %v78_v31 = vld [vmem:[%s4487_s0 + $0x1d0] sm:$0xff]  ;;  %v79_v32 = vld [vmem:[%s4487_s0 + $0x1d8] sm:$0xff]  ;;  %v48_v33 = vld [vmem:[%s4487_s0 + $0xe0] sm:$0xff]  ;;  %v97_v41 = vpack.c.bf16 %v47_v30, %v46_v29 }
  0x1e   :  { %v49_v34 = vld [vmem:[%s4487_s0 + $0xe8] sm:$0xff]  ;;  %v80_v39 = vld [vmem:[%s4487_s0 + $0x1e0] sm:$0xff]  ;;  %v4080_v42 = vpack.c.bf16 %v79_v32, %v78_v31  ;;  %v50_v45 = vld [vmem:[%s4487_s0 + $0xf0] sm:$0xff] }
  0x1f   :  { %v81_v40 = vld [vmem:[%s4487_s0 + $0x1e8] sm:$0xff]  ;;  %v98_v43 = vpack.c.bf16 %v49_v34, %v48_v33  ;;  %v51_v46 = vld [vmem:[%s4487_s0 + $0xf8] sm:$0xff]  ;;  %v82_v51 = vld [vmem:[%s4487_s0 + $0x1f0] sm:$0xff] }
  0x20   :  { %v4082_v44 = vpack.c.bf16 %v81_v40, %v80_v39  ;;  %v83_v52 = vld [vmem:[%s4487_s0 + $0x1f8] sm:$0xff]  ;;  %v99_v53 = vpack.c.bf16 %v51_v46, %v50_v45 }
  0x21   :  { %v4102_v54 = vpack.c.bf16 %v83_v52, %v82_v51 }
  0x22   :  { %3494 = vmatmul.mubr.msk.bf16.gmra.mrb[12].mxu0 %vm124_vm2, %v3966_v59  ;;  %3526 = vmatmul.mubr.msk.bf16.gmra.mrb[12].mxu1 %vm124_vm2, %v3968_v60 }
  0x23   :  { %3497 = vmatprep.mubr.msk.bf16.mxu0 %vm124_vm2, %v3970_v61  ;;  %3529 = vmatprep.mubr.msk.bf16.mxu1 %vm124_vm2, %v3972_v62 }
  0x2a   :  { %3498 = vmatmul.mubr.msk.bf16.gmra.mrb[16].mxu0 %vm124_vm2, %v4006_v7  ;;  %3530 = vmatmul.mubr.msk.bf16.gmra.mrb[16].mxu1 %vm124_vm2, %v4008_v10 }
  0x2b   :  { %3501 = vmatprep.mubr.msk.bf16.mxu0 %vm124_vm2, %v4010_v11  ;;  %3533 = vmatprep.mubr.msk.bf16.mxu1 %vm124_vm2, %v4012_v12 }
  0x32   :  { %3502 = vmatmul.mubr.msk.bf16.gmra.mrb[20].mxu0 %vm124_vm2, %v95_v21  ;;  %3534 = vmatmul.mubr.msk.bf16.gmra.mrb[20].mxu1 %vm124_vm2, %v4046_v24 }
  0x33   :  { %3505 = vmatprep.mubr.msk.bf16.mxu0 %vm124_vm2, %v96_v27  ;;  %3537 = vmatprep.mubr.msk.bf16.mxu1 %vm124_vm2, %v4048_v28 }
  0x3a   :  { %3506 = vmatmul.mubr.msk.bf16.gmra.mrb[24].mxu0 %vm124_vm2, %v97_v41  ;;  %3538 = vmatmul.mubr.msk.bf16.gmra.mrb[24].mxu1 %vm124_vm2, %v4080_v42 }
  0x3b   :  { %3509 = vmatprep.mubr.msk.bf16.mxu0 %vm124_vm2, %v98_v43  ;;  %3541 = vmatprep.mubr.msk.bf16.mxu1 %vm124_vm2, %v4082_v44 }
  0x42   :  { %3510 = vmatmul.mubr.msk.bf16.gmra.mrb[28].mxu0 %vm124_vm2, %v99_v53  ;;  %3542 = vmatmul.mubr.msk.bf16.gmra.mrb[28].mxu1 %vm124_vm2, %v4102_v54 }
  0x43   :  { %3547 = vmatprep.mubr.msk.bf16.mxu1 %vm124_vm2, %v3808_v8  ;;  %3613 = vmatprep.mubr.msk.bf16.mxu0 %vm124_vm2, %v3808_v8  ;;  %v4228_v8 = vld [vmem:[%s4489_s2] ss:$0 sm:$0xff] }
  0x4a   :  { %3548 = vmatmul.mubr.msk.bf16.vlgmr.msra.gmra.mrb[32].mxu1 %vm124_vm2, %v3843_v22  ;;  %3614 = vmatmul.mubr.msk.bf16.vlgmr.msra.gmra.mrb[32].mxu0 %vm124_vm2, %v3843_v22 }
  0x4b   :  { %3551 = vmatprep.mubr.msk.bf16.mxu1 %vm124_vm2, %v3850_v25  ;;  %3617 = vmatprep.mubr.msk.bf16.mxu0 %vm124_vm2, %v3850_v25 }
  0x52   :  { %3552 = vmatmul.mubr.msk.bf16.gmra.mrb[36].mxu1 %vm124_vm2, %v3886_v35  ;;  %3618 = vmatmul.mubr.msk.bf16.gmra.mrb[36].mxu0 %vm124_vm2, %v3886_v35 }
  0x53   :  { %3555 = vmatprep.mubr.msk.bf16.mxu1 %vm124_vm2, %v3890_v37  ;;  %3621 = vmatprep.mubr.msk.bf16.mxu0 %vm124_vm2, %v3890_v37 }
  0x5a   :  { %3556 = vmatmul.mubr.msk.bf16.gmra.mrb[40].mxu1 %vm124_vm2, %v3926_v47  ;;  %3622 = vmatmul.mubr.msk.bf16.gmra.mrb[40].mxu0 %vm124_vm2, %v3926_v47 }
  0x5b   :  { %3559 = vmatprep.mubr.msk.bf16.mxu1 %vm124_vm2, %v3930_v49  ;;  %3625 = vmatprep.mubr.msk.bf16.mxu0 %vm124_vm2, %v3930_v49 }
  0x62   :  { %3560 = vmatmul.mubr.msk.bf16.gmra.mrb[44].mxu1 %vm124_vm2, %v3966_v59  ;;  %3626 = vmatmul.mubr.msk.bf16.gmra.mrb[44].mxu0 %vm124_vm2, %v3966_v59 }
  0x63   :  { %3563 = vmatprep.mubr.msk.bf16.mxu1 %vm124_vm2, %v3970_v61  ;;  %3629 = vmatprep.mubr.msk.bf16.mxu0 %vm124_vm2, %v3970_v61 }
  0x6a   :  { %3564 = vmatmul.mubr.msk.bf16.gmra.mrb[48].mxu1 %vm124_vm2, %v4006_v7  ;;  %3630 = vmatmul.mubr.msk.bf16.gmra.mrb[48].mxu0 %vm124_vm2, %v4006_v7 }
  0x6b   :  { %3567 = vmatprep.mubr.msk.bf16.mxu1 %vm124_vm2, %v4010_v11  ;;  %3633 = vmatprep.mubr.msk.bf16.mxu0 %vm124_vm2, %v4010_v11 }
  0x72   :  { %3568 = vmatmul.mubr.msk.bf16.gmra.mrb[52].mxu1 %vm124_vm2, %v95_v21  ;;  %3634 = vmatmul.mubr.msk.bf16.gmra.mrb[52].mxu0 %vm124_vm2, %v95_v21 }
  0x73   :  { %3571 = vmatprep.mubr.msk.bf16.mxu1 %vm124_vm2, %v96_v27  ;;  %3637 = vmatprep.mubr.msk.bf16.mxu0 %vm124_vm2, %v96_v27 }
  0x7a   :  { %3572 = vmatmul.mubr.msk.bf16.gmra.mrb[56].mxu1 %vm124_vm2, %v97_v41  ;;  %3638 = vmatmul.mubr.msk.bf16.gmra.mrb[56].mxu0 %vm124_vm2, %v97_v41 }
  0x7b   :  { %3575 = vmatprep.mubr.msk.bf16.mxu1 %vm124_vm2, %v98_v43  ;;  %3641 = vmatprep.mubr.msk.bf16.mxu0 %vm124_vm2, %v98_v43 }
  0x82   :  { %3576 = vmatmul.mubr.msk.bf16.gmra.mrb[60].mxu1 %vm124_vm2, %v99_v53  ;;  %3642 = vmatmul.mubr.msk.bf16.gmra.mrb[60].mxu0 %vm124_vm2, %v99_v53 }
  0x83   :  { %3579 = vmatprep.mubr.msk.bf16.mxu1 %vm124_vm2, %v3810_v9  ;;  %3645 = vmatprep.mubr.msk.bf16.mxu0 %vm124_vm2, %v3810_v9 }
  0x8a   :  { %3580 = vmatmul.mubr.msk.bf16.gmra.mrb[64].mxu1 %vm124_vm2, %v3845_v23  ;;  %3646 = vmatmul.mubr.msk.bf16.gmra.mrb[64].mxu0 %vm124_vm2, %v3845_v23 }
  0x8b   :  { %3583 = vmatprep.mubr.msk.bf16.mxu1 %vm124_vm2, %v3852_v26  ;;  %3649 = vmatprep.mubr.msk.bf16.mxu0 %vm124_vm2, %v3852_v26 }
  0x92   :  { %3584 = vmatmul.mubr.msk.bf16.gmra.mrb[68].mxu1 %vm124_vm2, %v3888_v36  ;;  %3650 = vmatmul.mubr.msk.bf16.gmra.mrb[68].mxu0 %vm124_vm2, %v3888_v36 }
  0x93   :  { %3587 = vmatprep.mubr.msk.bf16.mxu1 %vm124_vm2, %v3892_v38  ;;  %3653 = vmatprep.mubr.msk.bf16.mxu0 %vm124_vm2, %v3892_v38 }
  0x9a   :  { %3588 = vmatmul.mubr.msk.bf16.gmra.mrb[72].mxu1 %vm124_vm2, %v3928_v48  ;;  %3654 = vmatmul.mubr.msk.bf16.gmra.mrb[72].mxu0 %vm124_vm2, %v3928_v48 }
  0x9b   :  { %3591 = vmatprep.mubr.msk.bf16.mxu1 %vm124_vm2, %v3932_v50  ;;  %3657 = vmatprep.mubr.msk.bf16.mxu0 %vm124_vm2, %v3932_v50 }
  0xa2   :  { %3592 = vmatmul.mubr.msk.bf16.gmra.mrb[76].mxu1 %vm124_vm2, %v3968_v60  ;;  %3658 = vmatmul.mubr.msk.bf16.gmra.mrb[76].mxu0 %vm124_vm2, %v3968_v60 }
  0xa3   :  { %3595 = vmatprep.mubr.msk.bf16.mxu1 %vm124_vm2, %v3972_v62  ;;  %3661 = vmatprep.mubr.msk.bf16.mxu0 %vm124_vm2, %v3972_v62 }
  0xaa   :  { %3596 = vmatmul.mubr.msk.bf16.gmra.mrb[80].mxu1 %vm124_vm2, %v4008_v10  ;;  %3662 = vmatmul.mubr.msk.bf16.gmra.mrb[80].mxu0 %vm124_vm2, %v4008_v10 }
  0xab   :  { %3599 = vmatprep.mubr.msk.bf16.mxu1 %vm124_vm2, %v4012_v12  ;;  %3665 = vmatprep.mubr.msk.bf16.mxu0 %vm124_vm2, %v4012_v12 }
  0xb2   :  { %3600 = vmatmul.mubr.msk.bf16.gmra.mrb[84].mxu1 %vm124_vm2, %v4046_v24  ;;  %3666 = vmatmul.mubr.msk.bf16.gmra.mrb[84].mxu0 %vm124_vm2, %v4046_v24 }
  0xb3   :  { %3603 = vmatprep.mubr.msk.bf16.mxu1 %vm124_vm2, %v4048_v28  ;;  %3669 = vmatprep.mubr.msk.bf16.mxu0 %vm124_vm2, %v4048_v28 }
  0xba   :  { %3604 = vmatmul.mubr.msk.bf16.gmra.mrb[88].mxu1 %vm124_vm2, %v4080_v42  ;;  %3670 = vmatmul.mubr.msk.bf16.gmra.mrb[88].mxu0 %vm124_vm2, %v4080_v42 }
  0xbb   :  { %3607 = vmatprep.mubr.msk.bf16.mxu1 %vm124_vm2, %v4082_v44  ;;  %3673 = vmatprep.mubr.msk.bf16.mxu0 %vm124_vm2, %v4082_v44 }
  0xc2   :  { %3608 = vmatmul.mubr.msk.bf16.gmra.mrb[92].mxu1 %vm124_vm2, %v4102_v54  ;;  %3674 = vmatmul.mubr.msk.bf16.gmra.mrb[92].mxu0 %vm124_vm2, %v4102_v54 }
  0xdd   :  { %v3483_v9 = vpop.f32.mrb[0].mxu0  ;;  %v3515_v22 = vpop.f32.mrb[0].mxu1 }
  0xde   :  { %v271_v23 = vadd.f32 %v3483_v9, %v4228_v8  ;;  %v399_v25 = vadd.f32 %v3515_v22, %v4228_v8  ;;  %v262_v26 = vpop.f32.mrb[1].mxu0  ;;  %v390_v35 = vpop.f32.mrb[1].mxu1 }
  0xdf   :  { %v263_v36 = vadd.f32 %v4228_v8, %v262_v26  ;;  %v391_v37 = vadd.f32 %v4228_v8, %v390_v35  ;;  %v3484_v38 = vpop.f32.mrb[2].mxu0  ;;  %v3516_v47 = vpop.f32.mrb[2].mxu1 }
  0xe0   :  { %v519_v48 = vmax.f32 %v271_v23, 0.0  ;;  %v274_v49 = vadd.f32 %v3484_v38, %v4228_v8  ;;  %v402_v50 = vadd.f32 %v3516_v47, %v4228_v8  ;;  %v265_v55 = vpop.f32.mrb[3].mxu0  ;;  %v393_v56 = vpop.f32.mrb[3].mxu1  ;;  %v551_v59 = vmax.f32 %v399_v25, 0.0 }
  0xe1   :  { %v266_v57 = vadd.f32 %v4228_v8, %v265_v55  ;;  %v394_v58 = vadd.f32 %v4228_v8, %v393_v56  ;;  %v517_v62 = vmax.f32 %v263_v36, 0.0  ;;  %v549_v63 = vmax.f32 %v391_v37, 0.0 }
  0xe2   :  { %v520_v60 = vmax.f32 %v274_v49, 0.0  ;;  %v552_v61 = vmax.f32 %v402_v50, 0.0 }
  0xe3   :  { %v518_v0 = vmax.f32 %v266_v57, 0.0  ;;  %v550_v1 = vmax.f32 %v394_v58, 0.0 }
  0xe4   :  { %v2815_v2 = vpack.c.bf16 %v520_v60, %v519_v48  ;;  %v2895_v3 = vpack.c.bf16 %v552_v61, %v551_v59 }
  0xe5   :  { %v2810_v4 = vpack.c.bf16 %v518_v0, %v517_v62  ;;  %v2890_v5 = vpack.c.bf16 %v550_v1, %v549_v63  ;;  %v3487_v6 = vpop.f32.mrb[4].mxu0  ;;  %v3519_v7 = vpop.f32.mrb[4].mxu1 }
  0xe6   :  { %3287 = vst [vmem:[#allocation2 + $0x8] sm:$0xff] %v2815_v2   ;;  %3303 = vst [vmem:[#allocation2 + $0x88] sm:$0xff] %v2895_v3   ;;  %v287_v10 = vadd.f32 %v3487_v6, %v4228_v8  ;;  %v415_v11 = vadd.f32 %v3519_v7, %v4228_v8  ;;  %v278_v12 = vpop.f32.mrb[5].mxu0  ;;  %v406_v13 = vpop.f32.mrb[5].mxu1 }
  0xe7   :  { %2811 = vst [vmem:[#allocation2] sm:$0xff] %v2810_v4   ;;  %3302 = vst [vmem:[#allocation2 + $0x80] sm:$0xff] %v2890_v5   ;;  %v279_v14 = vadd.f32 %v4228_v8, %v278_v12  ;;  %v407_v15 = vadd.f32 %v4228_v8, %v406_v13  ;;  %v3488_v16 = vpop.f32.mrb[6].mxu0  ;;  %v3520_v17 = vpop.f32.mrb[6].mxu1 }
  0xe8   :  { %v523_v18 = vmax.f32 %v287_v10, 0.0  ;;  %v290_v19 = vadd.f32 %v3488_v16, %v4228_v8  ;;  %v418_v20 = vadd.f32 %v3520_v17, %v4228_v8  ;;  %v281_v21 = vpop.f32.mrb[7].mxu0  ;;  %v409_v24 = vpop.f32.mrb[7].mxu1  ;;  %v555_v29 = vmax.f32 %v415_v11, 0.0 }
  0xe9   :  { %v282_v27 = vadd.f32 %v4228_v8, %v281_v21  ;;  %v410_v28 = vadd.f32 %v4228_v8, %v409_v24  ;;  %v521_v32 = vmax.f32 %v279_v14, 0.0  ;;  %v553_v33 = vmax.f32 %v407_v15, 0.0 }
  0xea   :  { %v524_v30 = vmax.f32 %v290_v19, 0.0  ;;  %v556_v31 = vmax.f32 %v418_v20, 0.0 }
  0xeb   :  { %v522_v34 = vmax.f32 %v282_v27, 0.0  ;;  %v554_v39 = vmax.f32 %v410_v28, 0.0 }
  0xec   :  { %v2825_v40 = vpack.c.bf16 %v524_v30, %v523_v18  ;;  %v2905_v41 = vpack.c.bf16 %v556_v31, %v555_v29 }
  0xed   :  { %v2820_v42 = vpack.c.bf16 %v522_v34, %v521_v32  ;;  %v2900_v43 = vpack.c.bf16 %v554_v39, %v553_v33  ;;  %v3491_v44 = vpop.f32.mrb[8].mxu0  ;;  %v3523_v45 = vpop.f32.mrb[8].mxu1 }
  0xee   :  { %3289 = vst [vmem:[#allocation2 + $0x18] sm:$0xff] %v2825_v40   ;;  %3305 = vst [vmem:[#allocation2 + $0x98] sm:$0xff] %v2905_v41   ;;  %v303_v46 = vadd.f32 %v3491_v44, %v4228_v8  ;;  %v431_v51 = vadd.f32 %v3523_v45, %v4228_v8  ;;  %v294_v52 = vpop.f32.mrb[9].mxu0  ;;  %v422_v53 = vpop.f32.mrb[9].mxu1 }
  0xef   :  { %3288 = vst [vmem:[#allocation2 + $0x10] sm:$0xff] %v2820_v42   ;;  %3304 = vst [vmem:[#allocation2 + $0x90] sm:$0xff] %v2900_v43   ;;  %v295_v54 = vadd.f32 %v4228_v8, %v294_v52  ;;  %v423_v9 = vadd.f32 %v4228_v8, %v422_v53  ;;  %v3492_v22 = vpop.f32.mrb[10].mxu0  ;;  %v3524_v23 = vpop.f32.mrb[10].mxu1 }
  0xf0   :  { %v527_v25 = vmax.f32 %v303_v46, 0.0  ;;  %v306_v26 = vadd.f32 %v3492_v22, %v4228_v8  ;;  %v434_v35 = vadd.f32 %v3524_v23, %v4228_v8  ;;  %v297_v36 = vpop.f32.mrb[11].mxu0  ;;  %v425_v37 = vpop.f32.mrb[11].mxu1  ;;  %v559_v48 = vmax.f32 %v431_v51, 0.0 }
  0xf1   :  { %v298_v38 = vadd.f32 %v4228_v8, %v297_v36  ;;  %v426_v47 = vadd.f32 %v4228_v8, %v425_v37  ;;  %v525_v55 = vmax.f32 %v295_v54, 0.0  ;;  %v557_v56 = vmax.f32 %v423_v9, 0.0 }
  0xf2   :  { %v528_v49 = vmax.f32 %v306_v26, 0.0  ;;  %v560_v50 = vmax.f32 %v434_v35, 0.0 }
  0xf3   :  { %v526_v57 = vmax.f32 %v298_v38, 0.0  ;;  %v558_v58 = vmax.f32 %v426_v47, 0.0 }
  0xf4   :  { %v2835_v59 = vpack.c.bf16 %v528_v49, %v527_v25  ;;  %v2915_v60 = vpack.c.bf16 %v560_v50, %v559_v48 }
  0xf5   :  { %v2830_v61 = vpack.c.bf16 %v526_v57, %v525_v55  ;;  %v2910_v62 = vpack.c.bf16 %v558_v58, %v557_v56  ;;  %v3495_v63 = vpop.f32.mrb[12].mxu0  ;;  %v3527_v0 = vpop.f32.mrb[12].mxu1 }
  0xf6   :  { %3291 = vst [vmem:[#allocation2 + $0x28] sm:$0xff] %v2835_v59   ;;  %3307 = vst [vmem:[#allocation2 + $0xa8] sm:$0xff] %v2915_v60   ;;  %v319_v1 = vadd.f32 %v3495_v63, %v4228_v8  ;;  %v447_v2 = vadd.f32 %v3527_v0, %v4228_v8  ;;  %v310_v3 = vpop.f32.mrb[13].mxu0  ;;  %v438_v4 = vpop.f32.mrb[13].mxu1 }
  0xf7   :  { %3290 = vst [vmem:[#allocation2 + $0x20] sm:$0xff] %v2830_v61   ;;  %3306 = vst [vmem:[#allocation2 + $0xa0] sm:$0xff] %v2910_v62   ;;  %v311_v5 = vadd.f32 %v4228_v8, %v310_v3  ;;  %v439_v6 = vadd.f32 %v4228_v8, %v438_v4  ;;  %v3496_v7 = vpop.f32.mrb[14].mxu0  ;;  %v3528_v10 = vpop.f32.mrb[14].mxu1 }
  0xf8   :  { %v531_v11 = vmax.f32 %v319_v1, 0.0  ;;  %v322_v12 = vadd.f32 %v3496_v7, %v4228_v8  ;;  %v450_v13 = vadd.f32 %v3528_v10, %v4228_v8  ;;  %v313_v14 = vpop.f32.mrb[15].mxu0  ;;  %v441_v15 = vpop.f32.mrb[15].mxu1  ;;  %v563_v18 = vmax.f32 %v447_v2, 0.0 }
  0xf9   :  { %v314_v16 = vadd.f32 %v4228_v8, %v313_v14  ;;  %v442_v17 = vadd.f32 %v4228_v8, %v441_v15  ;;  %v529_v21 = vmax.f32 %v311_v5, 0.0  ;;  %v561_v24 = vmax.f32 %v439_v6, 0.0 }
  0xfa   :  { %v532_v19 = vmax.f32 %v322_v12, 0.0  ;;  %v564_v20 = vmax.f32 %v450_v13, 0.0 }
  0xfb   :  { %v530_v27 = vmax.f32 %v314_v16, 0.0  ;;  %v562_v28 = vmax.f32 %v442_v17, 0.0 }
  0xfc   :  { %v2845_v29 = vpack.c.bf16 %v532_v19, %v531_v11  ;;  %v2925_v30 = vpack.c.bf16 %v564_v20, %v563_v18 }
  0xfd   :  { %v2840_v31 = vpack.c.bf16 %v530_v27, %v529_v21  ;;  %v2920_v32 = vpack.c.bf16 %v562_v28, %v561_v24  ;;  %v3499_v33 = vpop.f32.mrb[16].mxu0  ;;  %v3531_v34 = vpop.f32.mrb[16].mxu1 }
  0xfe   :  { %3293 = vst [vmem:[#allocation2 + $0x38] sm:$0xff] %v2845_v29   ;;  %3309 = vst [vmem:[#allocation2 + $0xb8] sm:$0xff] %v2925_v30   ;;  %v335_v39 = vadd.f32 %v3499_v33, %v4228_v8  ;;  %v463_v40 = vadd.f32 %v3531_v34, %v4228_v8  ;;  %v326_v41 = vpop.f32.mrb[17].mxu0  ;;  %v454_v42 = vpop.f32.mrb[17].mxu1 }
  0xff   :  { %3292 = vst [vmem:[#allocation2 + $0x30] sm:$0xff] %v2840_v31   ;;  %3308 = vst [vmem:[#allocation2 + $0xb0] sm:$0xff] %v2920_v32   ;;  %v327_v43 = vadd.f32 %v4228_v8, %v326_v41  ;;  %v455_v44 = vadd.f32 %v4228_v8, %v454_v42  ;;  %v3500_v45 = vpop.f32.mrb[18].mxu0  ;;  %v3532_v46 = vpop.f32.mrb[18].mxu1 }
 0x100   :  { %v535_v51 = vmax.f32 %v335_v39, 0.0  ;;  %v338_v52 = vadd.f32 %v3500_v45, %v4228_v8  ;;  %v466_v53 = vadd.f32 %v3532_v46, %v4228_v8  ;;  %v329_v54 = vpop.f32.mrb[19].mxu0  ;;  %v457_v9 = vpop.f32.mrb[19].mxu1  ;;  %v567_v25 = vmax.f32 %v463_v40, 0.0 }
 0x101   :  { %v330_v22 = vadd.f32 %v4228_v8, %v329_v54  ;;  %v458_v23 = vadd.f32 %v4228_v8, %v457_v9  ;;  %v533_v36 = vmax.f32 %v327_v43, 0.0  ;;  %v565_v37 = vmax.f32 %v455_v44, 0.0 }
 0x102   :  { %v536_v26 = vmax.f32 %v338_v52, 0.0  ;;  %v568_v35 = vmax.f32 %v466_v53, 0.0 }
 0x103   :  { %v534_v38 = vmax.f32 %v330_v22, 0.0  ;;  %v566_v47 = vmax.f32 %v458_v23, 0.0 }
 0x104   :  { %v2855_v48 = vpack.c.bf16 %v536_v26, %v535_v51  ;;  %v2935_v49 = vpack.c.bf16 %v568_v35, %v567_v25 }
 0x105   :  { %v2850_v50 = vpack.c.bf16 %v534_v38, %v533_v36  ;;  %v2930_v55 = vpack.c.bf16 %v566_v47, %v565_v37  ;;  %v3503_v56 = vpop.f32.mrb[20].mxu0  ;;  %v3535_v57 = vpop.f32.mrb[20].mxu1 }
 0x106   :  { %3295 = vst [vmem:[#allocation2 + $0x48] sm:$0xff] %v2855_v48   ;;  %3311 = vst [vmem:[#allocation2 + $0xc8] sm:$0xff] %v2935_v49   ;;  %v351_v58 = vadd.f32 %v3503_v56, %v4228_v8  ;;  %v479_v59 = vadd.f32 %v3535_v57, %v4228_v8  ;;  %v342_v60 = vpop.f32.mrb[21].mxu0  ;;  %v470_v61 = vpop.f32.mrb[21].mxu1 }
 0x107   :  { %3294 = vst [vmem:[#allocation2 + $0x40] sm:$0xff] %v2850_v50   ;;  %3310 = vst [vmem:[#allocation2 + $0xc0] sm:$0xff] %v2930_v55   ;;  %v343_v62 = vadd.f32 %v4228_v8, %v342_v60  ;;  %v471_v63 = vadd.f32 %v4228_v8, %v470_v61  ;;  %v3504_v0 = vpop.f32.mrb[22].mxu0  ;;  %v3536_v1 = vpop.f32.mrb[22].mxu1 }
 0x108   :  { %v539_v2 = vmax.f32 %v351_v58, 0.0  ;;  %v354_v3 = vadd.f32 %v3504_v0, %v4228_v8  ;;  %v482_v4 = vadd.f32 %v3536_v1, %v4228_v8  ;;  %v345_v5 = vpop.f32.mrb[23].mxu0  ;;  %v473_v6 = vpop.f32.mrb[23].mxu1  ;;  %v571_v11 = vmax.f32 %v479_v59, 0.0 }
 0x109   :  { %v346_v7 = vadd.f32 %v4228_v8, %v345_v5  ;;  %v474_v10 = vadd.f32 %v4228_v8, %v473_v6  ;;  %v537_v14 = vmax.f32 %v343_v62, 0.0  ;;  %v569_v15 = vmax.f32 %v471_v63, 0.0  ;;  %v4297_v5 = vld [vmem:[%s4489_s2 + $0x1] ss:$0 sm:$0xff] }
 0x10a   :  { %v540_v12 = vmax.f32 %v354_v3, 0.0  ;;  %v572_v13 = vmax.f32 %v482_v4, 0.0 }
 0x10b   :  { %v538_v16 = vmax.f32 %v346_v7, 0.0  ;;  %v570_v17 = vmax.f32 %v474_v10, 0.0 }
 0x10c   :  { %v2865_v18 = vpack.c.bf16 %v540_v12, %v539_v2  ;;  %v2945_v19 = vpack.c.bf16 %v572_v13, %v571_v11  ;;  %v4302_v12 = vld [vmem:[%s4489_s2 + $0x2] ss:$0 sm:$0xff] }
 0x10d   :  { %v2860_v20 = vpack.c.bf16 %v538_v16, %v537_v14  ;;  %v2940_v21 = vpack.c.bf16 %v570_v17, %v569_v15  ;;  %v3507_v24 = vpop.f32.mrb[24].mxu0  ;;  %v3539_v27 = vpop.f32.mrb[24].mxu1 }
 0x10e   :  { %3297 = vst [vmem:[#allocation2 + $0x58] sm:$0xff] %v2865_v18   ;;  %3313 = vst [vmem:[#allocation2 + $0xd8] sm:$0xff] %v2945_v19   ;;  %v367_v28 = vadd.f32 %v3507_v24, %v4228_v8  ;;  %v495_v29 = vadd.f32 %v3539_v27, %v4228_v8  ;;  %v358_v30 = vpop.f32.mrb[25].mxu0  ;;  %v486_v31 = vpop.f32.mrb[25].mxu1 }
 0x10f   :  { %3296 = vst [vmem:[#allocation2 + $0x50] sm:$0xff] %v2860_v20   ;;  %3312 = vst [vmem:[#allocation2 + $0xd0] sm:$0xff] %v2940_v21   ;;  %v359_v32 = vadd.f32 %v4228_v8, %v358_v30  ;;  %v487_v33 = vadd.f32 %v4228_v8, %v486_v31  ;;  %v3508_v34 = vpop.f32.mrb[26].mxu0  ;;  %v3540_v39 = vpop.f32.mrb[26].mxu1 }
 0x110   :  { %v543_v40 = vmax.f32 %v367_v28, 0.0  ;;  %v370_v41 = vadd.f32 %v3508_v34, %v4228_v8  ;;  %v498_v42 = vadd.f32 %v3540_v39, %v4228_v8  ;;  %v361_v43 = vpop.f32.mrb[27].mxu0  ;;  %v489_v44 = vpop.f32.mrb[27].mxu1  ;;  %v575_v51 = vmax.f32 %v495_v29, 0.0 }
 0x111   :  { %v362_v45 = vadd.f32 %v4228_v8, %v361_v43  ;;  %v490_v46 = vadd.f32 %v4228_v8, %v489_v44  ;;  %v541_v54 = vmax.f32 %v359_v32, 0.0  ;;  %v573_v9 = vmax.f32 %v487_v33, 0.0 }
 0x112   :  { %v544_v52 = vmax.f32 %v370_v41, 0.0  ;;  %v576_v53 = vmax.f32 %v498_v42, 0.0 }
 0x113   :  { %v542_v22 = vmax.f32 %v362_v45, 0.0  ;;  %v574_v23 = vmax.f32 %v490_v46, 0.0 }
 0x114   :  { %v2875_v25 = vpack.c.bf16 %v544_v52, %v543_v40  ;;  %v2955_v26 = vpack.c.bf16 %v576_v53, %v575_v51 }
 0x115   :  { %v2870_v35 = vpack.c.bf16 %v542_v22, %v541_v54  ;;  %v2950_v36 = vpack.c.bf16 %v574_v23, %v573_v9  ;;  %v3511_v37 = vpop.f32.mrb[28].mxu0  ;;  %v3543_v38 = vpop.f32.mrb[28].mxu1 }
 0x116   :  { %3299 = vst [vmem:[#allocation2 + $0x68] sm:$0xff] %v2875_v25   ;;  %3315 = vst [vmem:[#allocation2 + $0xe8] sm:$0xff] %v2955_v26   ;;  %v383_v47 = vadd.f32 %v3511_v37, %v4228_v8  ;;  %v511_v48 = vadd.f32 %v3543_v38, %v4228_v8  ;;  %v374_v49 = vpop.f32.mrb[29].mxu0  ;;  %v502_v50 = vpop.f32.mrb[29].mxu1 }
 0x117   :  { %3298 = vst [vmem:[#allocation2 + $0x60] sm:$0xff] %v2870_v35   ;;  %3314 = vst [vmem:[#allocation2 + $0xe0] sm:$0xff] %v2950_v36   ;;  %v375_v55 = vadd.f32 %v4228_v8, %v374_v49  ;;  %v503_v56 = vadd.f32 %v4228_v8, %v502_v50  ;;  %v3512_v57 = vpop.f32.mrb[30].mxu0  ;;  %v3544_v58 = vpop.f32.mrb[30].mxu1 }
 0x118   :  { %v547_v59 = vmax.f32 %v383_v47, 0.0  ;;  %v386_v60 = vadd.f32 %v3512_v57, %v4228_v8  ;;  %v514_v61 = vadd.f32 %v3544_v58, %v4228_v8  ;;  %v377_v62 = vpop.f32.mrb[31].mxu0  ;;  %v505_v63 = vpop.f32.mrb[31].mxu1  ;;  %v579_v2 = vmax.f32 %v511_v48, 0.0 }
 0x119   :  { %v378_v0 = vadd.f32 %v4228_v8, %v377_v62  ;;  %v506_v1 = vadd.f32 %v4228_v8, %v505_v63  ;;  %v545_v6 = vmax.f32 %v375_v55, 0.0  ;;  %v577_v7 = vmax.f32 %v503_v56, 0.0 }
 0x11a   :  { %v548_v3 = vmax.f32 %v386_v60, 0.0  ;;  %v580_v4 = vmax.f32 %v514_v61, 0.0 }
 0x11b   :  { %v546_v10 = vmax.f32 %v378_v0, 0.0  ;;  %v578_v11 = vmax.f32 %v506_v1, 0.0 }
 0x11c   :  { %v2885_v13 = vpack.c.bf16 %v548_v3, %v547_v59  ;;  %v2965_v14 = vpack.c.bf16 %v580_v4, %v579_v2 }
 0x11d   :  { %v2880_v8 = vpack.c.bf16 %v546_v10, %v545_v6  ;;  %v2960_v15 = vpack.c.bf16 %v578_v11, %v577_v7  ;;  %v3549_v16 = vpop.f32.mrb[32].mxu1  ;;  %v3615_v17 = vpop.f32.mrb[32].mxu0 }
 0x11e   :  { %3301 = vst [vmem:[#allocation2 + $0x78] sm:$0xff] %v2885_v13   ;;  %3317 = vst [vmem:[#allocation2 + $0xf8] sm:$0xff] %v2965_v14   ;;  %v957_v18 = vadd.f32 %v3549_v16, %v4297_v5  ;;  %v1643_v19 = vadd.f32 %v3615_v17, %v4302_v12  ;;  %v948_v20 = vpop.f32.mrb[33].mxu1  ;;  %v1634_v21 = vpop.f32.mrb[33].mxu0 }
 0x11f   :  { %3300 = vst [vmem:[#allocation2 + $0x70] sm:$0xff] %v2880_v8   ;;  %3316 = vst [vmem:[#allocation2 + $0xf0] sm:$0xff] %v2960_v15   ;;  %v949_v24 = vadd.f32 %v4297_v5, %v948_v20  ;;  %v1635_v27 = vadd.f32 %v4302_v12, %v1634_v21  ;;  %v3550_v28 = vpop.f32.mrb[34].mxu1  ;;  %v3616_v29 = vpop.f32.mrb[34].mxu0 }
 0x120   :  { %v1891_v30 = vmax.f32 %v1643_v19, 0.0  ;;  %v960_v31 = vadd.f32 %v3550_v28, %v4297_v5  ;;  %v1646_v32 = vadd.f32 %v3616_v29, %v4302_v12  ;;  %v951_v33 = vpop.f32.mrb[35].mxu1  ;;  %v1637_v34 = vpop.f32.mrb[35].mxu0  ;;  %v1205_v41 = vmax.f32 %v957_v18, 0.0 }
 0x121   :  { %v952_v39 = vadd.f32 %v4297_v5, %v951_v33  ;;  %v1638_v40 = vadd.f32 %v4302_v12, %v1637_v34 }
 0x122   :  { %v1206_v42 = vmax.f32 %v960_v31, 0.0  ;;  %v1892_v43 = vmax.f32 %v1646_v32, 0.0 }
 0x123   :  { %3698 = shalt.err (!%p3695_p4)
}
 0x124   :  { %s3699_s7 = scalar_lea.hbm %s4490_s3, 4096 }
 0x125   :  { %p3700_p5 = scmp.ne.s32.totalorder %s4490_s3, %s3699_s7  ;;  %p3703_p6 = scmp.lt.u32.totalorder %s3699_s7, %s4490_s3 }
 0x127   :  { %p3705_p7 = pnand %p3703_p6, %p3700_p5 }
 0x129   :  { %3708 = shalt.err (!%p3705_p7)
}
 0x12a   :  { %s3759_s12 = smov 64   ;;  %s3760_s13 = smov 4   ;;  %v1203_v44 = vmax.f32 %v949_v24, 0.0  ;;  %v1889_v45 = vmax.f32 %v1635_v27, 0.0  ;;  %v1204_v46 = vmax.f32 %v952_v39, 0.0  ;;  %v1890_v51 = vmax.f32 %v1638_v40, 0.0 }
 0x12b   :  { %2284 = dma.vmem_to_hbm [thread:$0]  %s2279_s28, 4096, %s4490_s3, [#allocation3], %s3759_s12, %s3759_s12, %s3760_s13   ;;  %v2975_v52 = vpack.c.bf16 %v1206_v42, %v1205_v41  ;;  %v3135_v53 = vpack.c.bf16 %v1892_v43, %v1891_v30  ;;  %v3553_v22 = vpop.f32.mrb[36].mxu1  ;;  %v3619_v23 = vpop.f32.mrb[36].mxu0 }
 0x12c   :  { %v2970_v54 = vpack.c.bf16 %v1204_v46, %v1203_v44  ;;  %v3130_v9 = vpack.c.bf16 %v1890_v51, %v1889_v45  ;;  %v973_v25 = vadd.f32 %v3553_v22, %v4297_v5  ;;  %v1659_v26 = vadd.f32 %v3619_v23, %v4302_v12  ;;  %v964_v35 = vpop.f32.mrb[37].mxu1  ;;  %v1650_v36 = vpop.f32.mrb[37].mxu0  ;;  %s3761_s19 = smov [#allocation4]   ;;  %s3762_s1 = smov [#allocation6]  }
 0x12d   :  { %3318 = vst [vmem:[#allocation4 + $0x8] sm:$0xff] %v2975_v52   ;;  %3349 = vst [vmem:[#allocation6 + $0x8] sm:$0xff] %v3135_v53   ;;  %v965_v37 = vadd.f32 %v4297_v5, %v964_v35  ;;  %v1651_v38 = vadd.f32 %v4302_v12, %v1650_v36  ;;  %v3554_v47 = vpop.f32.mrb[38].mxu1  ;;  %v3620_v48 = vpop.f32.mrb[38].mxu0  ;;  %s2290_s20 = sshll.u32 %s3761_s19, 4  ;;  %s2302_s21 = sshll.u32 %s3762_s1, 4  ;;  %s2291_s20 = int_to_ptr.vmem [resolvable:$true] %s2290_s20  ;;  %s4450_s21 = int_to_ptr.vmem [resolvable:$true] %s2302_s21 }
 0x12e   :  { %2971 = vst [vmem:[#allocation4] sm:$0xff] %v2970_v54   ;;  %3131 = vst [vmem:[#allocation6] sm:$0xff] %v3130_v9   ;;  %v1895_v49 = vmax.f32 %v1659_v26, 0.0  ;;  %v976_v50 = vadd.f32 %v3554_v47, %v4297_v5  ;;  %v1662_v55 = vadd.f32 %v3620_v48, %v4302_v12  ;;  %v967_v56 = vpop.f32.mrb[39].mxu1  ;;  %v1653_v57 = vpop.f32.mrb[39].mxu0  ;;  %v1209_v60 = vmax.f32 %v973_v25, 0.0  ;;  %p3714_p9 = scmp.lt.s32.totalorder %s2291_s20, %s2291_s20 }
 0x12f   :  { %v968_v58 = vadd.f32 %v4297_v5, %v967_v56  ;;  %v1654_v59 = vadd.f32 %v4302_v12, %v1653_v57  ;;  %v1207_v63 = vmax.f32 %v965_v37, 0.0  ;;  %v1893_v0 = vmax.f32 %v1651_v38, 0.0  ;;  %v3557_v10 = vpop.f32.mrb[40].mxu1  ;;  %v3623_v11 = vpop.f32.mrb[40].mxu0 }
 0x130   :  { %v1210_v61 = vmax.f32 %v976_v50, 0.0  ;;  %v1896_v62 = vmax.f32 %v1662_v55, 0.0  ;;  %v989_v13 = vadd.f32 %v3557_v10, %v4297_v5  ;;  %v1675_v14 = vadd.f32 %v3623_v11, %v4302_v12  ;;  %v980_v8 = vpop.f32.mrb[41].mxu1  ;;  %v1666_v15 = vpop.f32.mrb[41].mxu0 }
 0x131   :  { %v1208_v1 = vmax.f32 %v968_v58, 0.0  ;;  %v1894_v2 = vmax.f32 %v1654_v59, 0.0  ;;  %v981_v16 = vadd.f32 %v4297_v5, %v980_v8  ;;  %v1667_v17 = vadd.f32 %v4302_v12, %v1666_v15  ;;  %v3558_v18 = vpop.f32.mrb[42].mxu1  ;;  %v3624_v19 = vpop.f32.mrb[42].mxu0 }
 0x132   :  { %v2985_v3 = vpack.c.bf16 %v1210_v61, %v1209_v60  ;;  %v3145_v4 = vpack.c.bf16 %v1896_v62, %v1895_v49  ;;  %v1899_v20 = vmax.f32 %v1675_v14, 0.0  ;;  %v992_v21 = vadd.f32 %v3558_v18, %v4297_v5  ;;  %v983_v27 = vpop.f32.mrb[43].mxu1  ;;  %v1669_v28 = vpop.f32.mrb[43].mxu0 }
 0x133   :  { %v2980_v6 = vpack.c.bf16 %v1208_v1, %v1207_v63  ;;  %v3140_v7 = vpack.c.bf16 %v1894_v2, %v1893_v0  ;;  %v1678_v24 = vadd.f32 %v3624_v19, %v4302_v12  ;;  %v984_v29 = vadd.f32 %v4297_v5, %v983_v27 }
 0x134   :  { %3320 = vst [vmem:[#allocation4 + $0x18] sm:$0xff] %v2985_v3   ;;  %3351 = vst [vmem:[#allocation6 + $0x18] sm:$0xff] %v3145_v4   ;;  %v1670_v30 = vadd.f32 %v4302_v12, %v1669_v28  ;;  %v1213_v31 = vmax.f32 %v989_v13, 0.0  ;;  %v1214_v32 = vmax.f32 %v992_v21, 0.0  ;;  %v1211_v34 = vmax.f32 %v981_v16, 0.0 }
 0x135   :  { %3319 = vst [vmem:[#allocation4 + $0x10] sm:$0xff] %v2980_v6   ;;  %3350 = vst [vmem:[#allocation6 + $0x10] sm:$0xff] %v3140_v7   ;;  %v1900_v33 = vmax.f32 %v1678_v24, 0.0  ;;  %v1897_v39 = vmax.f32 %v1667_v17, 0.0  ;;  %v1212_v40 = vmax.f32 %v984_v29, 0.0  ;;  %v3561_v46 = vpop.f32.mrb[44].mxu1 }
 0x136   :  { %v1898_v41 = vmax.f32 %v1670_v30, 0.0  ;;  %v2995_v42 = vpack.c.bf16 %v1214_v32, %v1213_v31  ;;  %v3627_v51 = vpop.f32.mrb[44].mxu0  ;;  %v1005_v52 = vadd.f32 %v3561_v46, %v4297_v5  ;;  %v996_v54 = vpop.f32.mrb[45].mxu1 }
 0x137   :  { %v3155_v43 = vpack.c.bf16 %v1900_v33, %v1899_v20  ;;  %v2990_v44 = vpack.c.bf16 %v1212_v40, %v1211_v34  ;;  %v1691_v53 = vadd.f32 %v3627_v51, %v4302_v12  ;;  %v1682_v9 = vpop.f32.mrb[45].mxu0  ;;  %v997_v22 = vadd.f32 %v4297_v5, %v996_v54  ;;  %v3562_v25 = vpop.f32.mrb[46].mxu1 }
 0x138   :  { %v3150_v45 = vpack.c.bf16 %v1898_v41, %v1897_v39  ;;  %3322 = vst [vmem:[#allocation4 + $0x28] sm:$0xff] %v2995_v42   ;;  %v1683_v23 = vadd.f32 %v4302_v12, %v1682_v9  ;;  %v3628_v26 = vpop.f32.mrb[46].mxu0  ;;  %v1008_v36 = vadd.f32 %v3562_v25, %v4297_v5  ;;  %v999_v38 = vpop.f32.mrb[47].mxu1  ;;  %v1217_v50 = vmax.f32 %v1005_v52, 0.0 }
 0x139   :  { %3353 = vst [vmem:[#allocation6 + $0x28] sm:$0xff] %v3155_v43   ;;  %3321 = vst [vmem:[#allocation4 + $0x20] sm:$0xff] %v2990_v44   ;;  %v1903_v35 = vmax.f32 %v1691_v53, 0.0  ;;  %v1694_v37 = vadd.f32 %v3628_v26, %v4302_v12  ;;  %v1685_v47 = vpop.f32.mrb[47].mxu0  ;;  %v1000_v48 = vadd.f32 %v4297_v5, %v999_v38  ;;  %v1215_v57 = vmax.f32 %v997_v22, 0.0 }
 0x13a   :  { %3352 = vst [vmem:[#allocation6 + $0x20] sm:$0xff] %v3150_v45   ;;  %v1686_v49 = vadd.f32 %v4302_v12, %v1685_v47  ;;  %v1218_v55 = vmax.f32 %v1008_v36, 0.0  ;;  %v1901_v58 = vmax.f32 %v1683_v23, 0.0 }
 0x13b   :  { %v1904_v56 = vmax.f32 %v1694_v37, 0.0  ;;  %v1216_v59 = vmax.f32 %v1000_v48, 0.0 }
 0x13c   :  { %v1902_v60 = vmax.f32 %v1686_v49, 0.0  ;;  %v3005_v61 = vpack.c.bf16 %v1218_v55, %v1217_v50 }
 0x13d   :  { %v3165_v62 = vpack.c.bf16 %v1904_v56, %v1903_v35  ;;  %v3000_v63 = vpack.c.bf16 %v1216_v59, %v1215_v57  ;;  %v3565_v1 = vpop.f32.mrb[48].mxu1  ;;  %v3631_v2 = vpop.f32.mrb[48].mxu0 }
 0x13e   :  { %v3160_v0 = vpack.c.bf16 %v1902_v60, %v1901_v58  ;;  %3324 = vst [vmem:[#allocation4 + $0x38] sm:$0xff] %v3005_v61   ;;  %v1021_v3 = vadd.f32 %v3565_v1, %v4297_v5  ;;  %v1707_v4 = vadd.f32 %v3631_v2, %v4302_v12  ;;  %v1012_v6 = vpop.f32.mrb[49].mxu1  ;;  %v1698_v7 = vpop.f32.mrb[49].mxu0 }
 0x13f   :  { %3355 = vst [vmem:[#allocation6 + $0x38] sm:$0xff] %v3165_v62   ;;  %3323 = vst [vmem:[#allocation4 + $0x30] sm:$0xff] %v3000_v63   ;;  %v1013_v10 = vadd.f32 %v4297_v5, %v1012_v6  ;;  %v1699_v11 = vadd.f32 %v4302_v12, %v1698_v7  ;;  %v3566_v13 = vpop.f32.mrb[50].mxu1  ;;  %v3632_v14 = vpop.f32.mrb[50].mxu0 }
 0x140   :  { %3354 = vst [vmem:[#allocation6 + $0x30] sm:$0xff] %v3160_v0   ;;  %v1907_v8 = vmax.f32 %v1707_v4, 0.0  ;;  %v1024_v15 = vadd.f32 %v3566_v13, %v4297_v5  ;;  %v1710_v16 = vadd.f32 %v3632_v14, %v4302_v12  ;;  %v1015_v17 = vpop.f32.mrb[51].mxu1  ;;  %v1701_v18 = vpop.f32.mrb[51].mxu0  ;;  %v1221_v21 = vmax.f32 %v1021_v3, 0.0 }
 0x141   :  { %v1016_v19 = vadd.f32 %v4297_v5, %v1015_v17  ;;  %v1702_v20 = vadd.f32 %v4302_v12, %v1701_v18  ;;  %v1219_v28 = vmax.f32 %v1013_v10, 0.0  ;;  %v1905_v29 = vmax.f32 %v1699_v11, 0.0 }
 0x142   :  { %v1222_v24 = vmax.f32 %v1024_v15, 0.0  ;;  %v1908_v27 = vmax.f32 %v1710_v16, 0.0 }
 0x143   :  { %v1220_v30 = vmax.f32 %v1016_v19, 0.0  ;;  %v1906_v31 = vmax.f32 %v1702_v20, 0.0 }
 0x144   :  { %v3015_v32 = vpack.c.bf16 %v1222_v24, %v1221_v21  ;;  %v3175_v33 = vpack.c.bf16 %v1908_v27, %v1907_v8 }
 0x145   :  { %v3010_v34 = vpack.c.bf16 %v1220_v30, %v1219_v28  ;;  %v3170_v39 = vpack.c.bf16 %v1906_v31, %v1905_v29  ;;  %v3569_v40 = vpop.f32.mrb[52].mxu1  ;;  %v3635_v41 = vpop.f32.mrb[52].mxu0 }
 0x146   :  { %3326 = vst [vmem:[#allocation4 + $0x48] sm:$0xff] %v3015_v32   ;;  %3357 = vst [vmem:[#allocation6 + $0x48] sm:$0xff] %v3175_v33   ;;  %v1037_v42 = vadd.f32 %v3569_v40, %v4297_v5  ;;  %v1723_v43 = vadd.f32 %v3635_v41, %v4302_v12  ;;  %v1028_v44 = vpop.f32.mrb[53].mxu1  ;;  %v1714_v45 = vpop.f32.mrb[53].mxu0 }
 0x147   :  { %3325 = vst [vmem:[#allocation4 + $0x40] sm:$0xff] %v3010_v34   ;;  %3356 = vst [vmem:[#allocation6 + $0x40] sm:$0xff] %v3170_v39   ;;  %v1029_v46 = vadd.f32 %v4297_v5, %v1028_v44  ;;  %v1715_v51 = vadd.f32 %v4302_v12, %v1714_v45  ;;  %v3570_v52 = vpop.f32.mrb[54].mxu1  ;;  %v3636_v53 = vpop.f32.mrb[54].mxu0 }
 0x148   :  { %v1911_v54 = vmax.f32 %v1723_v43, 0.0  ;;  %v1040_v9 = vadd.f32 %v3570_v52, %v4297_v5  ;;  %v1726_v22 = vadd.f32 %v3636_v53, %v4302_v12  ;;  %v1031_v23 = vpop.f32.mrb[55].mxu1  ;;  %v1717_v25 = vpop.f32.mrb[55].mxu0  ;;  %v1225_v36 = vmax.f32 %v1037_v42, 0.0 }
 0x149   :  { %v1032_v26 = vadd.f32 %v4297_v5, %v1031_v23  ;;  %v1718_v35 = vadd.f32 %v4302_v12, %v1717_v25  ;;  %v1223_v47 = vmax.f32 %v1029_v46, 0.0  ;;  %v1909_v48 = vmax.f32 %v1715_v51, 0.0 }
 0x14a   :  { %v1226_v37 = vmax.f32 %v1040_v9, 0.0  ;;  %v1912_v38 = vmax.f32 %v1726_v22, 0.0 }
 0x14b   :  { %v1224_v49 = vmax.f32 %v1032_v26, 0.0  ;;  %v1910_v50 = vmax.f32 %v1718_v35, 0.0 }
 0x14c   :  { %v3025_v55 = vpack.c.bf16 %v1226_v37, %v1225_v36  ;;  %v3185_v56 = vpack.c.bf16 %v1912_v38, %v1911_v54 }
 0x14d   :  { %v3020_v57 = vpack.c.bf16 %v1224_v49, %v1223_v47  ;;  %v3180_v58 = vpack.c.bf16 %v1910_v50, %v1909_v48  ;;  %v3573_v59 = vpop.f32.mrb[56].mxu1  ;;  %v3639_v60 = vpop.f32.mrb[56].mxu0 }
 0x14e   :  { %3328 = vst [vmem:[#allocation4 + $0x58] sm:$0xff] %v3025_v55   ;;  %3359 = vst [vmem:[#allocation6 + $0x58] sm:$0xff] %v3185_v56   ;;  %v1053_v61 = vadd.f32 %v3573_v59, %v4297_v5  ;;  %v1739_v62 = vadd.f32 %v3639_v60, %v4302_v12  ;;  %v1044_v63 = vpop.f32.mrb[57].mxu1  ;;  %v1730_v0 = vpop.f32.mrb[57].mxu0 }
 0x14f   :  { %3327 = vst [vmem:[#allocation4 + $0x50] sm:$0xff] %v3020_v57   ;;  %3358 = vst [vmem:[#allocation6 + $0x50] sm:$0xff] %v3180_v58   ;;  %v1045_v1 = vadd.f32 %v4297_v5, %v1044_v63  ;;  %v1731_v2 = vadd.f32 %v4302_v12, %v1730_v0  ;;  %v3574_v3 = vpop.f32.mrb[58].mxu1  ;;  %v3640_v4 = vpop.f32.mrb[58].mxu0 }
 0x150   :  { %v1915_v6 = vmax.f32 %v1739_v62, 0.0  ;;  %v1056_v7 = vadd.f32 %v3574_v3, %v4297_v5  ;;  %v1742_v10 = vadd.f32 %v3640_v4, %v4302_v12  ;;  %v1047_v11 = vpop.f32.mrb[59].mxu1  ;;  %v1733_v13 = vpop.f32.mrb[59].mxu0  ;;  %v1229_v15 = vmax.f32 %v1053_v61, 0.0 }
 0x151   :  { %v1048_v14 = vadd.f32 %v4297_v5, %v1047_v11  ;;  %v1734_v8 = vadd.f32 %v4302_v12, %v1733_v13  ;;  %v1227_v18 = vmax.f32 %v1045_v1, 0.0  ;;  %v1913_v19 = vmax.f32 %v1731_v2, 0.0 }
 0x152   :  { %v1230_v16 = vmax.f32 %v1056_v7, 0.0  ;;  %v1916_v17 = vmax.f32 %v1742_v10, 0.0 }
 0x153   :  { %v1228_v20 = vmax.f32 %v1048_v14, 0.0  ;;  %v1914_v21 = vmax.f32 %v1734_v8, 0.0 }
 0x154   :  { %v3035_v24 = vpack.c.bf16 %v1230_v16, %v1229_v15  ;;  %v3195_v27 = vpack.c.bf16 %v1916_v17, %v1915_v6 }
 0x155   :  { %v3030_v28 = vpack.c.bf16 %v1228_v20, %v1227_v18  ;;  %v3190_v29 = vpack.c.bf16 %v1914_v21, %v1913_v19  ;;  %v3577_v30 = vpop.f32.mrb[60].mxu1  ;;  %v3643_v31 = vpop.f32.mrb[60].mxu0 }
 0x156   :  { %3330 = vst [vmem:[#allocation4 + $0x68] sm:$0xff] %v3035_v24   ;;  %3361 = vst [vmem:[#allocation6 + $0x68] sm:$0xff] %v3195_v27   ;;  %v1069_v32 = vadd.f32 %v3577_v30, %v4297_v5  ;;  %v1755_v33 = vadd.f32 %v3643_v31, %v4302_v12  ;;  %v1060_v34 = vpop.f32.mrb[61].mxu1  ;;  %v1746_v39 = vpop.f32.mrb[61].mxu0 }
 0x157   :  { %3329 = vst [vmem:[#allocation4 + $0x60] sm:$0xff] %v3030_v28   ;;  %3360 = vst [vmem:[#allocation6 + $0x60] sm:$0xff] %v3190_v29   ;;  %v1061_v40 = vadd.f32 %v4297_v5, %v1060_v34  ;;  %v1747_v41 = vadd.f32 %v4302_v12, %v1746_v39  ;;  %v3578_v42 = vpop.f32.mrb[62].mxu1  ;;  %v3644_v43 = vpop.f32.mrb[62].mxu0 }
 0x158   :  { %v1919_v44 = vmax.f32 %v1755_v33, 0.0  ;;  %v1072_v45 = vadd.f32 %v3578_v42, %v4297_v5  ;;  %v1758_v46 = vadd.f32 %v3644_v43, %v4302_v12  ;;  %v1063_v51 = vpop.f32.mrb[63].mxu1  ;;  %v1749_v52 = vpop.f32.mrb[63].mxu0  ;;  %v1233_v9 = vmax.f32 %v1069_v32, 0.0 }
 0x159   :  { %v1064_v53 = vadd.f32 %v4297_v5, %v1063_v51  ;;  %v1750_v54 = vadd.f32 %v4302_v12, %v1749_v52  ;;  %v1231_v25 = vmax.f32 %v1061_v40, 0.0  ;;  %v1917_v26 = vmax.f32 %v1747_v41, 0.0 }
 0x15a   :  { %v1234_v22 = vmax.f32 %v1072_v45, 0.0  ;;  %v1920_v23 = vmax.f32 %v1758_v46, 0.0 }
 0x15b   :  { %v1232_v35 = vmax.f32 %v1064_v53, 0.0  ;;  %v1918_v36 = vmax.f32 %v1750_v54, 0.0 }
 0x15c   :  { %v3045_v37 = vpack.c.bf16 %v1234_v22, %v1233_v9  ;;  %v3205_v38 = vpack.c.bf16 %v1920_v23, %v1919_v44 }
 0x15d   :  { %v3040_v47 = vpack.c.bf16 %v1232_v35, %v1231_v25  ;;  %v3200_v48 = vpack.c.bf16 %v1918_v36, %v1917_v26  ;;  %v3581_v49 = vpop.f32.mrb[64].mxu1  ;;  %v3647_v50 = vpop.f32.mrb[64].mxu0 }
 0x15e   :  { %3332 = vst [vmem:[#allocation4 + $0x78] sm:$0xff] %v3045_v37   ;;  %3363 = vst [vmem:[#allocation6 + $0x78] sm:$0xff] %v3205_v38   ;;  %v1085_v55 = vadd.f32 %v3581_v49, %v4297_v5  ;;  %v1771_v56 = vadd.f32 %v3647_v50, %v4302_v12  ;;  %v1076_v57 = vpop.f32.mrb[65].mxu1  ;;  %v1762_v58 = vpop.f32.mrb[65].mxu0 }
 0x15f   :  { %3331 = vst [vmem:[#allocation4 + $0x70] sm:$0xff] %v3040_v47   ;;  %3362 = vst [vmem:[#allocation6 + $0x70] sm:$0xff] %v3200_v48   ;;  %v1077_v59 = vadd.f32 %v4297_v5, %v1076_v57  ;;  %v1763_v60 = vadd.f32 %v4302_v12, %v1762_v58  ;;  %v3582_v61 = vpop.f32.mrb[66].mxu1  ;;  %v3648_v62 = vpop.f32.mrb[66].mxu0 }
 0x160   :  { %v1923_v63 = vmax.f32 %v1771_v56, 0.0  ;;  %v1088_v0 = vadd.f32 %v3582_v61, %v4297_v5  ;;  %v1774_v1 = vadd.f32 %v3648_v62, %v4302_v12  ;;  %v1079_v2 = vpop.f32.mrb[67].mxu1  ;;  %v1765_v3 = vpop.f32.mrb[67].mxu0  ;;  %v1237_v7 = vmax.f32 %v1085_v55, 0.0 }
 0x161   :  { %v1080_v4 = vadd.f32 %v4297_v5, %v1079_v2  ;;  %v1766_v6 = vadd.f32 %v4302_v12, %v1765_v3  ;;  %v1235_v13 = vmax.f32 %v1077_v59, 0.0  ;;  %v1921_v14 = vmax.f32 %v1763_v60, 0.0 }
 0x162   :  { %v1238_v10 = vmax.f32 %v1088_v0, 0.0  ;;  %v1924_v11 = vmax.f32 %v1774_v1, 0.0 }
 0x163   :  { %v1236_v8 = vmax.f32 %v1080_v4, 0.0  ;;  %v1922_v15 = vmax.f32 %v1766_v6, 0.0 }
 0x164   :  { %v3055_v16 = vpack.c.bf16 %v1238_v10, %v1237_v7  ;;  %v3215_v17 = vpack.c.bf16 %v1924_v11, %v1923_v63 }
 0x165   :  { %v3050_v18 = vpack.c.bf16 %v1236_v8, %v1235_v13  ;;  %v3210_v19 = vpack.c.bf16 %v1922_v15, %v1921_v14  ;;  %v3585_v20 = vpop.f32.mrb[68].mxu1  ;;  %v3651_v21 = vpop.f32.mrb[68].mxu0 }
 0x166   :  { %3334 = vst [vmem:[#allocation4 + $0x88] sm:$0xff] %v3055_v16   ;;  %3365 = vst [vmem:[#allocation6 + $0x88] sm:$0xff] %v3215_v17   ;;  %v1101_v24 = vadd.f32 %v3585_v20, %v4297_v5  ;;  %v1787_v27 = vadd.f32 %v3651_v21, %v4302_v12  ;;  %v1092_v28 = vpop.f32.mrb[69].mxu1  ;;  %v1778_v29 = vpop.f32.mrb[69].mxu0 }
 0x167   :  { %3333 = vst [vmem:[#allocation4 + $0x80] sm:$0xff] %v3050_v18   ;;  %3364 = vst [vmem:[#allocation6 + $0x80] sm:$0xff] %v3210_v19   ;;  %v1093_v30 = vadd.f32 %v4297_v5, %v1092_v28  ;;  %v1779_v31 = vadd.f32 %v4302_v12, %v1778_v29  ;;  %v3586_v32 = vpop.f32.mrb[70].mxu1  ;;  %v3652_v33 = vpop.f32.mrb[70].mxu0 }
 0x168   :  { %v1927_v34 = vmax.f32 %v1787_v27, 0.0  ;;  %v1104_v39 = vadd.f32 %v3586_v32, %v4297_v5  ;;  %v1790_v40 = vadd.f32 %v3652_v33, %v4302_v12  ;;  %v1095_v41 = vpop.f32.mrb[71].mxu1  ;;  %v1781_v42 = vpop.f32.mrb[71].mxu0  ;;  %v1241_v45 = vmax.f32 %v1101_v24, 0.0 }
 0x169   :  { %v1096_v43 = vadd.f32 %v4297_v5, %v1095_v41  ;;  %v1782_v44 = vadd.f32 %v4302_v12, %v1781_v42  ;;  %v1239_v52 = vmax.f32 %v1093_v30, 0.0  ;;  %v1925_v53 = vmax.f32 %v1779_v31, 0.0 }
 0x16a   :  { %v1242_v46 = vmax.f32 %v1104_v39, 0.0  ;;  %v1928_v51 = vmax.f32 %v1790_v40, 0.0 }
 0x16b   :  { %v1240_v54 = vmax.f32 %v1096_v43, 0.0  ;;  %v1926_v9 = vmax.f32 %v1782_v44, 0.0 }
 0x16c   :  { %v3065_v22 = vpack.c.bf16 %v1242_v46, %v1241_v45  ;;  %v3225_v23 = vpack.c.bf16 %v1928_v51, %v1927_v34 }
 0x16d   :  { %v3060_v25 = vpack.c.bf16 %v1240_v54, %v1239_v52  ;;  %v3220_v26 = vpack.c.bf16 %v1926_v9, %v1925_v53  ;;  %v3589_v35 = vpop.f32.mrb[72].mxu1  ;;  %v3655_v36 = vpop.f32.mrb[72].mxu0 }
 0x16e   :  { %3336 = vst [vmem:[#allocation4 + $0x98] sm:$0xff] %v3065_v22   ;;  %3367 = vst [vmem:[#allocation6 + $0x98] sm:$0xff] %v3225_v23   ;;  %v1117_v37 = vadd.f32 %v3589_v35, %v4297_v5  ;;  %v1803_v38 = vadd.f32 %v3655_v36, %v4302_v12  ;;  %v1108_v47 = vpop.f32.mrb[73].mxu1  ;;  %v1794_v48 = vpop.f32.mrb[73].mxu0 }
 0x16f   :  { %3335 = vst [vmem:[#allocation4 + $0x90] sm:$0xff] %v3060_v25   ;;  %3366 = vst [vmem:[#allocation6 + $0x90] sm:$0xff] %v3220_v26   ;;  %v1109_v49 = vadd.f32 %v4297_v5, %v1108_v47  ;;  %v1795_v50 = vadd.f32 %v4302_v12, %v1794_v48  ;;  %v3590_v55 = vpop.f32.mrb[74].mxu1  ;;  %v3656_v56 = vpop.f32.mrb[74].mxu0 }
 0x170   :  { %v1931_v57 = vmax.f32 %v1803_v38, 0.0  ;;  %v1120_v58 = vadd.f32 %v3590_v55, %v4297_v5  ;;  %v1806_v59 = vadd.f32 %v3656_v56, %v4302_v12  ;;  %v1111_v60 = vpop.f32.mrb[75].mxu1  ;;  %v1797_v61 = vpop.f32.mrb[75].mxu0  ;;  %v1245_v0 = vmax.f32 %v1117_v37, 0.0 }
 0x171   :  { %v1112_v62 = vadd.f32 %v4297_v5, %v1111_v60  ;;  %v1798_v63 = vadd.f32 %v4302_v12, %v1797_v61  ;;  %v1243_v3 = vmax.f32 %v1109_v49, 0.0  ;;  %v1929_v4 = vmax.f32 %v1795_v50, 0.0 }
 0x172   :  { %v1246_v1 = vmax.f32 %v1120_v58, 0.0  ;;  %v1932_v2 = vmax.f32 %v1806_v59, 0.0 }
 0x173   :  { %v1244_v6 = vmax.f32 %v1112_v62, 0.0  ;;  %v1930_v7 = vmax.f32 %v1798_v63, 0.0 }
 0x174   :  { %v3075_v10 = vpack.c.bf16 %v1246_v1, %v1245_v0  ;;  %v3235_v11 = vpack.c.bf16 %v1932_v2, %v1931_v57 }
 0x175   :  { %v3070_v13 = vpack.c.bf16 %v1244_v6, %v1243_v3  ;;  %v3230_v14 = vpack.c.bf16 %v1930_v7, %v1929_v4  ;;  %v3593_v8 = vpop.f32.mrb[76].mxu1  ;;  %v3659_v15 = vpop.f32.mrb[76].mxu0 }
 0x176   :  { %3338 = vst [vmem:[#allocation4 + $0xa8] sm:$0xff] %v3075_v10   ;;  %3369 = vst [vmem:[#allocation6 + $0xa8] sm:$0xff] %v3235_v11   ;;  %v1133_v16 = vadd.f32 %v3593_v8, %v4297_v5  ;;  %v1819_v17 = vadd.f32 %v3659_v15, %v4302_v12  ;;  %v1124_v18 = vpop.f32.mrb[77].mxu1  ;;  %v1810_v19 = vpop.f32.mrb[77].mxu0 }
 0x177   :  { %3337 = vst [vmem:[#allocation4 + $0xa0] sm:$0xff] %v3070_v13   ;;  %3368 = vst [vmem:[#allocation6 + $0xa0] sm:$0xff] %v3230_v14   ;;  %v1125_v20 = vadd.f32 %v4297_v5, %v1124_v18  ;;  %v1811_v21 = vadd.f32 %v4302_v12, %v1810_v19  ;;  %v3594_v24 = vpop.f32.mrb[78].mxu1  ;;  %v3660_v27 = vpop.f32.mrb[78].mxu0 }
 0x178   :  { %v1935_v28 = vmax.f32 %v1819_v17, 0.0  ;;  %v1136_v29 = vadd.f32 %v3594_v24, %v4297_v5  ;;  %v1822_v30 = vadd.f32 %v3660_v27, %v4302_v12  ;;  %v1127_v31 = vpop.f32.mrb[79].mxu1  ;;  %v1813_v32 = vpop.f32.mrb[79].mxu0  ;;  %v1249_v39 = vmax.f32 %v1133_v16, 0.0 }
 0x179   :  { %v1128_v33 = vadd.f32 %v4297_v5, %v1127_v31  ;;  %v1814_v34 = vadd.f32 %v4302_v12, %v1813_v32  ;;  %v1247_v42 = vmax.f32 %v1125_v20, 0.0  ;;  %v1933_v43 = vmax.f32 %v1811_v21, 0.0 }
 0x17a   :  { %v1250_v40 = vmax.f32 %v1136_v29, 0.0  ;;  %v1936_v41 = vmax.f32 %v1822_v30, 0.0 }
 0x17b   :  { %v1248_v44 = vmax.f32 %v1128_v33, 0.0  ;;  %v1934_v45 = vmax.f32 %v1814_v34, 0.0 }
 0x17c   :  { %v3085_v46 = vpack.c.bf16 %v1250_v40, %v1249_v39  ;;  %v3245_v51 = vpack.c.bf16 %v1936_v41, %v1935_v28 }
 0x17d   :  { %v3080_v52 = vpack.c.bf16 %v1248_v44, %v1247_v42  ;;  %v3240_v53 = vpack.c.bf16 %v1934_v45, %v1933_v43  ;;  %v3597_v54 = vpop.f32.mrb[80].mxu1  ;;  %v3663_v9 = vpop.f32.mrb[80].mxu0 }
 0x17e   :  { %3340 = vst [vmem:[#allocation4 + $0xb8] sm:$0xff] %v3085_v46   ;;  %3371 = vst [vmem:[#allocation6 + $0xb8] sm:$0xff] %v3245_v51   ;;  %v1149_v22 = vadd.f32 %v3597_v54, %v4297_v5  ;;  %v1835_v23 = vadd.f32 %v3663_v9, %v4302_v12  ;;  %v1140_v25 = vpop.f32.mrb[81].mxu1  ;;  %v1826_v26 = vpop.f32.mrb[81].mxu0 }
 0x17f   :  { %3339 = vst [vmem:[#allocation4 + $0xb0] sm:$0xff] %v3080_v52   ;;  %3370 = vst [vmem:[#allocation6 + $0xb0] sm:$0xff] %v3240_v53   ;;  %v1141_v35 = vadd.f32 %v4297_v5, %v1140_v25  ;;  %v1827_v36 = vadd.f32 %v4302_v12, %v1826_v26  ;;  %v3598_v37 = vpop.f32.mrb[82].mxu1  ;;  %v3664_v38 = vpop.f32.mrb[82].mxu0 }
 0x180   :  { %v1939_v47 = vmax.f32 %v1835_v23, 0.0  ;;  %v1152_v48 = vadd.f32 %v3598_v37, %v4297_v5  ;;  %v1838_v49 = vadd.f32 %v3664_v38, %v4302_v12  ;;  %v1143_v50 = vpop.f32.mrb[83].mxu1  ;;  %v1829_v55 = vpop.f32.mrb[83].mxu0  ;;  %v1253_v58 = vmax.f32 %v1149_v22, 0.0 }
 0x181   :  { %v1144_v56 = vadd.f32 %v4297_v5, %v1143_v50  ;;  %v1830_v57 = vadd.f32 %v4302_v12, %v1829_v55  ;;  %v1251_v61 = vmax.f32 %v1141_v35, 0.0  ;;  %v1937_v62 = vmax.f32 %v1827_v36, 0.0 }
 0x182   :  { %v1254_v59 = vmax.f32 %v1152_v48, 0.0  ;;  %v1940_v60 = vmax.f32 %v1838_v49, 0.0 }
 0x183   :  { %v1252_v63 = vmax.f32 %v1144_v56, 0.0  ;;  %v1938_v0 = vmax.f32 %v1830_v57, 0.0 }
 0x184   :  { %v3095_v1 = vpack.c.bf16 %v1254_v59, %v1253_v58  ;;  %v3255_v2 = vpack.c.bf16 %v1940_v60, %v1939_v47 }
 0x185   :  { %v3090_v3 = vpack.c.bf16 %v1252_v63, %v1251_v61  ;;  %v3250_v4 = vpack.c.bf16 %v1938_v0, %v1937_v62  ;;  %v3601_v6 = vpop.f32.mrb[84].mxu1  ;;  %v3667_v7 = vpop.f32.mrb[84].mxu0 }
 0x186   :  { %3342 = vst [vmem:[#allocation4 + $0xc8] sm:$0xff] %v3095_v1   ;;  %3373 = vst [vmem:[#allocation6 + $0xc8] sm:$0xff] %v3255_v2   ;;  %v1165_v10 = vadd.f32 %v3601_v6, %v4297_v5  ;;  %v1851_v11 = vadd.f32 %v3667_v7, %v4302_v12  ;;  %v1156_v13 = vpop.f32.mrb[85].mxu1  ;;  %v1842_v14 = vpop.f32.mrb[85].mxu0 }
 0x187   :  { %3341 = vst [vmem:[#allocation4 + $0xc0] sm:$0xff] %v3090_v3   ;;  %3372 = vst [vmem:[#allocation6 + $0xc0] sm:$0xff] %v3250_v4   ;;  %v1157_v8 = vadd.f32 %v4297_v5, %v1156_v13  ;;  %v1843_v15 = vadd.f32 %v4302_v12, %v1842_v14  ;;  %v3602_v16 = vpop.f32.mrb[86].mxu1  ;;  %v3668_v17 = vpop.f32.mrb[86].mxu0  ;;  %v3685_v14 = vld [vmem:[%s4489_s2 + $0x1] ss:$0 sm:$0xff] }
 0x188   :  { %v1943_v18 = vmax.f32 %v1851_v11, 0.0  ;;  %v1168_v19 = vadd.f32 %v3602_v16, %v4297_v5  ;;  %v1854_v20 = vadd.f32 %v3668_v17, %v4302_v12  ;;  %v1159_v21 = vpop.f32.mrb[87].mxu1  ;;  %v1845_v24 = vpop.f32.mrb[87].mxu0  ;;  %v1257_v29 = vmax.f32 %v1165_v10, 0.0 }
 0x189   :  { %v1160_v27 = vadd.f32 %v4297_v5, %v1159_v21  ;;  %v1846_v28 = vadd.f32 %v4302_v12, %v1845_v24  ;;  %v1255_v32 = vmax.f32 %v1157_v8, 0.0  ;;  %v1941_v33 = vmax.f32 %v1843_v15, 0.0 }
 0x18a   :  { %v1258_v30 = vmax.f32 %v1168_v19, 0.0  ;;  %v1944_v31 = vmax.f32 %v1854_v20, 0.0  ;;  %v3686_v19 = vld [vmem:[%s4489_s2 + $0x2] ss:$0 sm:$0xff]  ;;  %s3709_s2 = scalar_lea.vmem %s2291_s20, 4096 }
 0x18b   :  { %v1256_v34 = vmax.f32 %v1160_v27, 0.0  ;;  %v1942_v39 = vmax.f32 %v1846_v28, 0.0  ;;  %p3710_p8 = scmp.ne.s32.totalorder %s2291_s20, %s3709_s2  ;;  %p3715_p10 = scmp.lt.s32.totalorder %s3709_s2, %s3709_s2 }
 0x18c   :  { %v3105_v40 = vpack.c.bf16 %v1258_v30, %v1257_v29  ;;  %v3265_v41 = vpack.c.bf16 %v1944_v31, %v1943_v18 }
 0x18d   :  { %v3100_v42 = vpack.c.bf16 %v1256_v34, %v1255_v32  ;;  %v3260_v43 = vpack.c.bf16 %v1942_v39, %v1941_v33  ;;  %v3605_v44 = vpop.f32.mrb[88].mxu1  ;;  %v3671_v45 = vpop.f32.mrb[88].mxu0  ;;  %p3716_p11 = por %p3715_p10, %p3714_p9 }
 0x18e   :  { %3344 = vst [vmem:[#allocation4 + $0xd8] sm:$0xff] %v3105_v40   ;;  %3375 = vst [vmem:[#allocation6 + $0xd8] sm:$0xff] %v3265_v41   ;;  %v1181_v46 = vadd.f32 %v3605_v44, %v4297_v5  ;;  %v1867_v51 = vadd.f32 %v3671_v45, %v4302_v12  ;;  %v1172_v52 = vpop.f32.mrb[89].mxu1  ;;  %v1858_v53 = vpop.f32.mrb[89].mxu0 }
 0x18f   :  { %3343 = vst [vmem:[#allocation4 + $0xd0] sm:$0xff] %v3100_v42   ;;  %3374 = vst [vmem:[#allocation6 + $0xd0] sm:$0xff] %v3260_v43   ;;  %v1173_v54 = vadd.f32 %v4297_v5, %v1172_v52  ;;  %v1859_v9 = vadd.f32 %v4302_v12, %v1858_v53  ;;  %v3606_v22 = vpop.f32.mrb[90].mxu1  ;;  %v3672_v23 = vpop.f32.mrb[90].mxu0  ;;  %p3717_p12 = pnand %p3716_p11, %p3710_p8 }
 0x190   :  { %v1947_v25 = vmax.f32 %v1867_v51, 0.0  ;;  %v1184_v26 = vadd.f32 %v3606_v22, %v4297_v5  ;;  %v1870_v35 = vadd.f32 %v3672_v23, %v4302_v12  ;;  %v1175_v36 = vpop.f32.mrb[91].mxu1  ;;  %v1861_v37 = vpop.f32.mrb[91].mxu0  ;;  %v1261_v48 = vmax.f32 %v1181_v46, 0.0 }
 0x191   :  { %v1176_v38 = vadd.f32 %v4297_v5, %v1175_v36  ;;  %v1862_v47 = vadd.f32 %v4302_v12, %v1861_v37  ;;  %v1259_v55 = vmax.f32 %v1173_v54, 0.0  ;;  %v1945_v56 = vmax.f32 %v1859_v9, 0.0 }
 0x192   :  { %v1262_v49 = vmax.f32 %v1184_v26, 0.0  ;;  %v1948_v50 = vmax.f32 %v1870_v35, 0.0 }
 0x193   :  { %v1260_v57 = vmax.f32 %v1176_v38, 0.0  ;;  %v1946_v58 = vmax.f32 %v1862_v47, 0.0 }
 0x194   :  { %v3115_v59 = vpack.c.bf16 %v1262_v49, %v1261_v48  ;;  %v3275_v60 = vpack.c.bf16 %v1948_v50, %v1947_v25 }
 0x195   :  { %v3110_v61 = vpack.c.bf16 %v1260_v57, %v1259_v55  ;;  %v3270_v62 = vpack.c.bf16 %v1946_v58, %v1945_v56  ;;  %v3609_v63 = vpop.f32.mrb[92].mxu1  ;;  %v3675_v0 = vpop.f32.mrb[92].mxu0 }
 0x196   :  { %3346 = vst [vmem:[#allocation4 + $0xe8] sm:$0xff] %v3115_v59   ;;  %3377 = vst [vmem:[#allocation6 + $0xe8] sm:$0xff] %v3275_v60   ;;  %v1197_v1 = vadd.f32 %v3609_v63, %v4297_v5  ;;  %v1883_v2 = vadd.f32 %v3675_v0, %v4302_v12  ;;  %v1188_v3 = vpop.f32.mrb[93].mxu1  ;;  %v1874_v4 = vpop.f32.mrb[93].mxu0 }
 0x197   :  { %3345 = vst [vmem:[#allocation4 + $0xe0] sm:$0xff] %v3110_v61   ;;  %3376 = vst [vmem:[#allocation6 + $0xe0] sm:$0xff] %v3270_v62   ;;  %v1189_v6 = vadd.f32 %v4297_v5, %v1188_v3  ;;  %v1875_v7 = vadd.f32 %v4302_v12, %v1874_v4  ;;  %v3610_v10 = vpop.f32.mrb[94].mxu1  ;;  %v3676_v11 = vpop.f32.mrb[94].mxu0 }
 0x198   :  { %v1951_v13 = vmax.f32 %v1883_v2, 0.0  ;;  %v1200_v8 = vadd.f32 %v3685_v14, %v3610_v10  ;;  %v1886_v15 = vadd.f32 %v3676_v11, %v4302_v12  ;;  %v1191_v16 = vpop.f32.mrb[95].mxu1  ;;  %v1877_v17 = vpop.f32.mrb[95].mxu0  ;;  %v1265_v20 = vmax.f32 %v1197_v1, 0.0 }
 0x199   :  { %v1192_v18 = vadd.f32 %v3685_v14, %v1191_v16  ;;  %v1878_v5 = vadd.f32 %v3686_v19, %v1877_v17  ;;  %v1263_v27 = vmax.f32 %v1189_v6, 0.0  ;;  %v1949_v28 = vmax.f32 %v1875_v7, 0.0 }
 0x19a   :  { %v1266_v21 = vmax.f32 %v1200_v8, 0.0  ;;  %v1952_v24 = vmax.f32 %v1886_v15, 0.0 }
 0x19b   :  { %v1264_v29 = vmax.f32 %v1192_v18, 0.0  ;;  %v1950_v30 = vmax.f32 %v1878_v5, 0.0 }
 0x19c   :  { %v3125_v12 = vpack.c.bf16 %v1266_v21, %v1265_v20  ;;  %v3285_v31 = vpack.c.bf16 %v1952_v24, %v1951_v13 }
 0x19d   :  { %v3120_v32 = vpack.c.bf16 %v1264_v29, %v1263_v27  ;;  %v3280_v33 = vpack.c.bf16 %v1950_v30, %v1949_v28 }
 0x19e   :  { %3348 = vst [vmem:[#allocation4 + $0xf8] sm:$0xff] %v3125_v12   ;;  %3379 = vst [vmem:[#allocation6 + $0xf8] sm:$0xff] %v3285_v31  }
 0x19f   :  { %3347 = vst [vmem:[#allocation4 + $0xf0] sm:$0xff] %v3120_v32   ;;  %3378 = vst [vmem:[#allocation6 + $0xf0] sm:$0xff] %v3280_v33  }
 0x1a0   :  { %3720 = shalt.err (!%p3717_p12)
}
 0x1a1   :  { %s3721_s23 = scalar_lea.hbm %s4491_s4, 4096 }
 0x1a2   :  { %p3722_p13 = scmp.ne.s32.totalorder %s4491_s4, %s3721_s23  ;;  %p3725_p0 = scmp.lt.u32.totalorder %s3721_s23, %s4491_s4 }
 0x1a4   :  { %p3727_p1 = pnand %p3725_p0, %p3722_p13 }
 0x1a6   :  { %3730 = shalt.err (!%p3727_p1)
}
 0x1a7   :  { %2296 = dma.vmem_to_hbm [thread:$0]  %s2291_s20, 4096, %s4491_s4, [#allocation5], %s3759_s12, %s3759_s12, %s3760_s13  }
 0x1a8   :  { %s3731_s30 = scalar_lea.vmem %s4450_s21, 4096  ;;  %p3736_p3 = scmp.lt.s32.totalorder %s4450_s21, %s4450_s21 }
 0x1a9   :  { %p3732_p2 = scmp.ne.s32.totalorder %s4450_s21, %s3731_s30  ;;  %p3737_p4 = scmp.lt.s32.totalorder %s3731_s30, %s3731_s30 }
 0x1ab   :  { %p3738_p5 = por %p3737_p4, %p3736_p3 }
 0x1ad   :  { %p3739_p6 = pnand %p3738_p5, %p3732_p2 }
 0x1af   :  { %3742 = shalt.err (!%p3739_p6)
}
 0x1b0   :  { %s3743_s8 = scalar_lea.hbm %s4492_s5, 4096 }
 0x1b1   :  { %p3744_p7 = scmp.ne.s32.totalorder %s4492_s5, %s3743_s8  ;;  %p3747_p8 = scmp.lt.u32.totalorder %s3743_s8, %s4492_s5 }
 0x1b3   :  { %p3749_p9 = pnand %p3747_p8, %p3744_p7 }
 0x1b5   :  { %3752 = shalt.err (!%p3749_p9)
}
 0x1b6   :  { %2308 = dma.vmem_to_hbm [thread:$0]  %s4450_s21, 4096, %s4492_s5, [#allocation5], %s3759_s12, %s3759_s12, %s3760_s13  }
 0x1b7   :  { %3753 = dma.done.wait [#allocation3], 4096  }
 0x1b8   :  { %3754 = vsyncadd [#allocation3], 4294963200 }
 0x1b9   :  { %3755 = dma.done.wait [#allocation5], 8192  }
 0x1ba   :  { %3756 = vsyncadd [#allocation5], 4294959104 }
 0x1bb   :  { %2318 = vsyncpa [#allocation3], 1 }
 0x1bc   :  { %2319 = vsyncpa [#allocation5], 1 }

</bundles_post_ra>
